<compile_context>
chip_gen: v6e
topology: v6e:2x2x1
jax: 0.10.0
libtpu: 0.0.40
codegen_flags: <defaults>
</compile_context>

<pallas_src>
import functools

import jax
import jax.numpy as jnp
from jax.experimental import pallas as pl
from jax.experimental.pallas import tpu as pltpu

# Strictly-positive floor for the Dirichlet concentrations (softplus can
# underflow to exactly 0.0 in f32 for pre-activations below ~-87).
_ALPHA_EPS = float(jnp.finfo(jnp.float32).tiny)


def _round_up(x, m):
    return ((x + m - 1) // m) * m


def _softplus(x):
    # Branch-free, numerically stable softplus. Matches torch.nn.Softplus
    # (beta=1, threshold=20) to well below f32 precision.
    return jnp.maximum(x, 0.0) + jnp.log1p(jnp.exp(-jnp.abs(x)))


def _mlp_dirichlet_kernel(x_ref, w1_ref, b1_ref, w2_ref, b2_ref, w3_ref, b3_ref,
                          alphas_ref):
    # One batch tile per grid step; weights/biases are VMEM-resident across steps.
    x = x_ref[...]

    h1 = jnp.dot(x, w1_ref[...], preferred_element_type=jnp.float32) + b1_ref[...]
    h1 = jnp.maximum(h1, 0.0)                                   # ReLU

    h2 = jnp.dot(h1, w2_ref[...], preferred_element_type=jnp.float32) + b2_ref[...]
    h2 = jnp.maximum(h2, 0.0)                                   # ReLU

    o = jnp.dot(h2, w3_ref[...], preferred_element_type=jnp.float32) + b3_ref[...]

    # Softplus -> strictly positive alphas; 128-wide lane-dense (unmasked) store.
    alphas_ref[...] = jnp.maximum(_softplus(o), _ALPHA_EPS).astype(alphas_ref.dtype)


def _init_linear(key, fan_in, fan_out):
    # Deterministic synthetic init mimicking torch.nn.Linear default:
    # U(-1/sqrt(fan_in), 1/sqrt(fan_in)) for weight and bias.
    kw, kb = jax.random.split(key)
    bound = 1.0 / float(fan_in) ** 0.5
    w = jax.random.uniform(kw, (fan_in, fan_out), minval=-bound, maxval=bound,
                           dtype=jnp.float32)
    b = jax.random.uniform(kb, (1, fan_out), minval=-bound, maxval=bound,
                           dtype=jnp.float32)
    return w, b


def init_params(key, in_dim, h_dim, out_dim):
    k1, k2, k3 = jax.random.split(key, 3)
    w1, b1 = _init_linear(k1, in_dim, h_dim)
    w2, b2 = _init_linear(k2, h_dim, h_dim)
    w3, b3 = _init_linear(k3, h_dim, out_dim)
    return (w1, b1, w2, b2, w3, b3)


def _pad_params(params, h_pad, o_pad):
    """Zero-pad hidden/output widths to lane-friendly multiples of 128 (exact)."""
    w1, b1, w2, b2, w3, b3 = params

    def pad_to(a, rows, cols):
        return jnp.pad(a, ((0, rows - a.shape[0]), (0, cols - a.shape[1])))

    in_dim = w1.shape[0]
    return (
        pad_to(w1, in_dim, h_pad), pad_to(b1, 1, h_pad),
        pad_to(w2, h_pad, h_pad), pad_to(b2, 1, h_pad),
        pad_to(w3, h_pad, o_pad), pad_to(b3, 1, o_pad),
    )


def _mlp_jax(data, params):
    # Pure-JAX MLP (same math) — reference and small-batch fast path.
    w1, b1, w2, b2, w3, b3 = params
    h1 = jnp.maximum(data @ w1 + b1, 0.0)
    h2 = jnp.maximum(h1 @ w2 + b2, 0.0)
    o = h2 @ w3 + b3
    return jnp.maximum(_softplus(o), _ALPHA_EPS)


@functools.partial(jax.jit, static_argnames=("out_shape", "tile_b", "min_pallas_rows"))
def vb_dirichlet_nnx_forward(X, params, out_shape, *, tile_b=512, min_pallas_rows=128):
    """Pallas forward. Returns `alphas` (the Dirichlet concentration parameters)."""
    w1, _, _, _, w3, _ = params
    in_dim = X.shape[-2] * X.shape[-1]
    h_dim = w1.shape[-1]
    out_dim = w3.shape[-1]

    # data = X.flatten(-2), then collapse remaining leading dims for the matmul.
    data = X.reshape((-1, in_dim))
    batch = data.shape[0]

    # Tiny batches: launch/DMA overhead dominates; let XLA fuse the MLP.
    if batch < min_pallas_rows:
        return _mlp_jax(data, params).reshape(out_shape)

    # Pad hidden/output widths to 128-wide lanes (exact: zero pads contribute 0).
    h_pad = _round_up(max(h_dim, 1), 128)
    o_pad = _round_up(max(out_dim, 1), 128)
    packed = _pad_params(params, h_pad, o_pad)

    # Adaptive batch tile: fewer grid steps for small batches, capped for VMEM.
    tile_b = min(tile_b, _round_up(batch, 8))
    padded_batch = _round_up(batch, tile_b)
    if padded_batch != batch:
        data = jnp.pad(data, ((0, padded_batch - batch), (0, 0)))

    grid = (pl.cdiv(padded_batch, tile_b),)
    resident = lambda i: (0, 0)  # same block every step -> weights stay in VMEM

    alphas_padded = pl.pallas_call(
        _mlp_dirichlet_kernel,
        out_shape=jax.ShapeDtypeStruct((padded_batch, o_pad), jnp.float32),
        grid=grid,
        in_specs=[
            pl.BlockSpec((tile_b, in_dim), lambda i: (i, 0)),   # batch-tiled input
            pl.BlockSpec(packed[0].shape, resident),            # w1
            pl.BlockSpec(packed[1].shape, resident),            # b1
            pl.BlockSpec(packed[2].shape, resident),            # w2
            pl.BlockSpec(packed[3].shape, resident),            # b2
            pl.BlockSpec(packed[4].shape, resident),            # w3
            pl.BlockSpec(packed[5].shape, resident),            # b3
        ],
        out_specs=pl.BlockSpec((tile_b, o_pad), lambda i: (i, 0)),  # lane-dense output
        compiler_params=pltpu.CompilerParams(
            dimension_semantics=("parallel",),                  # megacore on v7x
        ),
    )(data, *packed)

    # Drop batch padding and padded output lanes, then .view(*out_shape).
    return alphas_padded[:batch, :out_dim].reshape(out_shape)


def reference_forward(X, params, out_shape):
    # Pure-JAX reference of the same forward pass (for correctness check).
    in_dim = X.shape[-2] * X.shape[-1]
    data = X.reshape((-1, in_dim))
    return _mlp_jax(data, params).reshape(out_shape)


if __name__ == "__main__":
    key = jax.random.PRNGKey(0)
    kx, kp, kx_small = jax.random.split(key, 3)

    # Small shapes consistent with the module:
    #   in_shape  = [256, 8, 8] -> in_dim  = 8*8 = 64, 256 rows after flatten(-2)
    #   out_shape = [256, 1, 4] -> out_dim = 1*4 = 4 (Dirichlet over 4 categories/row)
    in_shape = (256, 8, 8)
    out_shape = (256, 1, 4)
    h_dim = 16  # module default
    in_dim = in_shape[-1] * in_shape[-2]
    out_dim = out_shape[-1] * out_shape[-2]

    X = jax.random.normal(kx, in_shape, dtype=jnp.float32)
    params = init_params(kp, in_dim, h_dim, out_dim)

    # Pallas path (batch >= min_pallas_rows -> tiled grid kernel).
    alphas = jax.block_until_ready(vb_dirichlet_nnx_forward(X, params, out_shape))
    ref = reference_forward(X, params, out_shape)
    assert alphas.shape == out_shape
    assert bool(jnp.all(alphas > 0.0)), "Dirichlet concentrations must be positive"
    assert bool(jnp.allclose(alphas, ref, rtol=1e-5, atol=1e-5)), "mismatch vs reference"

    # Small-batch fast path (bypasses Pallas; overhead-bound regime).
    small_in_shape = (8, 8, 8)
    small_out_shape = (8, 1, 4)
    Xs = jax.random.normal(kx_small, small_in_shape, dtype=jnp.float32)
    alphas_s = jax.block_until_ready(
        vb_dirichlet_nnx_forward(Xs, params, small_out_shape))
    ref_s = reference_forward(Xs, params, small_out_shape)
    assert alphas_s.shape == small_out_shape
    assert bool(jnp.all(alphas_s > 0.0))
    assert bool(jnp.allclose(alphas_s, ref_s, rtol=1e-5, atol=1e-5))

    # TODO(synk): torch.distributions.Dirichlet object construction has no Pallas
    # equivalent; the kernel returns the concentration parameters `alphas`.
    print("KERNEL_OK")
</pallas_src>

<mosaic_0001>
module attributes {stable_mosaic.version = 11 : i64} {
  func.func @_mlp_dirichlet_kernel(%arg0: i32, %arg1: memref<256x64xf32, #tpu.memory_space<vmem>>, %arg2: memref<64x128xf32, #tpu.memory_space<vmem>>, %arg3: memref<1x128xf32, #tpu.memory_space<vmem>>, %arg4: memref<128x128xf32, #tpu.memory_space<vmem>>, %arg5: memref<1x128xf32, #tpu.memory_space<vmem>>, %arg6: memref<128x128xf32, #tpu.memory_space<vmem>>, %arg7: memref<1x128xf32, #tpu.memory_space<vmem>>, %arg8: memref<256x128xf32, #tpu.memory_space<vmem>>) attributes {dimension_semantics = [#tpu.dimension_semantics<parallel>], iteration_bounds = array<i64: 1>, scalar_prefetch = 0 : i64, scratch_operands = 0 : i64, tpu.core_type = #tpu.core_type<tc>, window_params = [{transform_indices = @transform_0, window_bounds = array<i64: 256, 64>}, {pipeline_mode = #tpu.pipeline_mode<synchronous>, transform_indices = @transform_1, window_bounds = array<i64: 64, 128>}, {pipeline_mode = #tpu.pipeline_mode<synchronous>, transform_indices = @transform_2, window_bounds = array<i64: 1, 128>}, {pipeline_mode = #tpu.pipeline_mode<synchronous>, transform_indices = @transform_3, window_bounds = array<i64: 128, 128>}, {pipeline_mode = #tpu.pipeline_mode<synchronous>, transform_indices = @transform_4, window_bounds = array<i64: 1, 128>}, {pipeline_mode = #tpu.pipeline_mode<synchronous>, transform_indices = @transform_5, window_bounds = array<i64: 128, 128>}, {pipeline_mode = #tpu.pipeline_mode<synchronous>, transform_indices = @transform_6, window_bounds = array<i64: 1, 128>}, {transform_indices = @transform_7, window_bounds = array<i64: 256, 128>}]} {
    %c0 = arith.constant 0 : index
    %c0_0 = arith.constant 0 : index
    %0 = vector.load %arg1[%c0, %c0_0] : memref<256x64xf32, #tpu.memory_space<vmem>>, vector<256x64xf32>
    %c0_1 = arith.constant 0 : index
    %c0_2 = arith.constant 0 : index
    %1 = vector.load %arg2[%c0_1, %c0_2] : memref<64x128xf32, #tpu.memory_space<vmem>>, vector<64x128xf32>
    %cst = arith.constant dense<0.000000e+00> : vector<256x128xf32>
    %2 = tpu.matmul %0, %1, %cst {dimension_numbers = #tpu.dot_dimension_numbers<[1], [0], [0], [1], [0, 0, 1, 1], [], []>} : vector<256x64xf32>, vector<64x128xf32>, vector<256x128xf32> -> vector<256x128xf32>
    %c0_3 = arith.constant 0 : index
    %c0_4 = arith.constant 0 : index
    %3 = vector.load %arg3[%c0_3, %c0_4] : memref<1x128xf32, #tpu.memory_space<vmem>>, vector<1x128xf32>
    %4 = vector.broadcast %3 : vector<1x128xf32> to vector<256x128xf32>
    %5 = arith.addf %2, %4 : vector<256x128xf32>
    %cst_5 = arith.constant 0.000000e+00 : f32
    %6 = vector.broadcast %cst_5 : f32 to vector<256x128xf32>
    %7 = arith.maximumf %5, %6 : vector<256x128xf32>
    %c0_6 = arith.constant 0 : index
    %c0_7 = arith.constant 0 : index
    %8 = vector.load %arg4[%c0_6, %c0_7] : memref<128x128xf32, #tpu.memory_space<vmem>>, vector<128x128xf32>
    %cst_8 = arith.constant dense<0.000000e+00> : vector<256x128xf32>
    %9 = tpu.matmul %7, %8, %cst_8 {dimension_numbers = #tpu.dot_dimension_numbers<[1], [0], [0], [1], [0, 0, 1, 1], [], []>} : vector<256x128xf32>, vector<128x128xf32>, vector<256x128xf32> -> vector<256x128xf32>
    %c0_9 = arith.constant 0 : index
    %c0_10 = arith.constant 0 : index
    %10 = vector.load %arg5[%c0_9, %c0_10] : memref<1x128xf32, #tpu.memory_space<vmem>>, vector<1x128xf32>
    %11 = vector.broadcast %10 : vector<1x128xf32> to vector<256x128xf32>
    %12 = arith.addf %9, %11 : vector<256x128xf32>
    %cst_11 = arith.constant 0.000000e+00 : f32
    %13 = vector.broadcast %cst_11 : f32 to vector<256x128xf32>
    %14 = arith.maximumf %12, %13 : vector<256x128xf32>
    %c0_12 = arith.constant 0 : index
    %c0_13 = arith.constant 0 : index
    %15 = vector.load %arg6[%c0_12, %c0_13] : memref<128x128xf32, #tpu.memory_space<vmem>>, vector<128x128xf32>
    %cst_14 = arith.constant dense<0.000000e+00> : vector<256x128xf32>
    %16 = tpu.matmul %14, %15, %cst_14 {dimension_numbers = #tpu.dot_dimension_numbers<[1], [0], [0], [1], [0, 0, 1, 1], [], []>} : vector<256x128xf32>, vector<128x128xf32>, vector<256x128xf32> -> vector<256x128xf32>
    %c0_15 = arith.constant 0 : index
    %c0_16 = arith.constant 0 : index
    %17 = vector.load %arg7[%c0_15, %c0_16] : memref<1x128xf32, #tpu.memory_space<vmem>>, vector<1x128xf32>
    %18 = vector.broadcast %17 : vector<1x128xf32> to vector<256x128xf32>
    %19 = arith.addf %16, %18 : vector<256x128xf32>
    %cst_17 = arith.constant 0.000000e+00 : f32
    %20 = vector.broadcast %cst_17 : f32 to vector<256x128xf32>
    %21 = arith.maximumf %19, %20 : vector<256x128xf32>
    %22 = math.absf %19 : vector<256x128xf32>
    %cst_18 = arith.constant 0.000000e+00 : f32
    %23 = vector.broadcast %cst_18 : f32 to vector<256x128xf32>
    %24 = arith.subf %23, %22 : vector<256x128xf32>
    %25 = math.exp %24 : vector<256x128xf32>
    %26 = math.log1p %25 : vector<256x128xf32>
    %27 = arith.addf %21, %26 : vector<256x128xf32>
    %cst_19 = arith.constant 1.17549435E-38 : f32
    %28 = vector.broadcast %cst_19 : f32 to vector<256x128xf32>
    %29 = arith.maximumf %27, %28 : vector<256x128xf32>
    %c0_20 = arith.constant 0 : index
    %c0_21 = arith.constant 0 : index
    %30 = vector.load %arg8[%c0_20, %c0_21] : memref<256x128xf32, #tpu.memory_space<vmem>>, vector<256x128xf32>
    tpu.vector_store %arg8[%c0_20, %c0_21], %29 {strides = array<i32>} : memref<256x128xf32, #tpu.memory_space<vmem>>, vector<256x128xf32>,
    return
  }
  func.func @transform_0(%arg0: i32) -> (i32, i32) {
    %c0_i32 = arith.constant 0 : i32
    %c0_i32_0 = arith.constant 0 : i32
    return %arg0, %c0_i32 : i32, i32
  }
  func.func @transform_1(%arg0: i32) -> (i32, i32) {
    %c0_i32 = arith.constant 0 : i32
    %c0_i32_0 = arith.constant 0 : i32
    %c0_i32_1 = arith.constant 0 : i32
    return %c0_i32, %c0_i32_0 : i32, i32
  }
  func.func @transform_2(%arg0: i32) -> (i32, i32) {
    %c0_i32 = arith.constant 0 : i32
    %c0_i32_0 = arith.constant 0 : i32
    %c0_i32_1 = arith.constant 0 : i32
    return %c0_i32, %c0_i32_0 : i32, i32
  }
  func.func @transform_3(%arg0: i32) -> (i32, i32) {
    %c0_i32 = arith.constant 0 : i32
    %c0_i32_0 = arith.constant 0 : i32
    %c0_i32_1 = arith.constant 0 : i32
    return %c0_i32, %c0_i32_0 : i32, i32
  }
  func.func @transform_4(%arg0: i32) -> (i32, i32) {
    %c0_i32 = arith.constant 0 : i32
    %c0_i32_0 = arith.constant 0 : i32
    %c0_i32_1 = arith.constant 0 : i32
    return %c0_i32, %c0_i32_0 : i32, i32
  }
  func.func @transform_5(%arg0: i32) -> (i32, i32) {
    %c0_i32 = arith.constant 0 : i32
    %c0_i32_0 = arith.constant 0 : i32
    %c0_i32_1 = arith.constant 0 : i32
    return %c0_i32, %c0_i32_0 : i32, i32
  }
  func.func @transform_6(%arg0: i32) -> (i32, i32) {
    %c0_i32 = arith.constant 0 : i32
    %c0_i32_0 = arith.constant 0 : i32
    %c0_i32_1 = arith.constant 0 : i32
    return %c0_i32, %c0_i32_0 : i32, i32
  }
  func.func @transform_7(%arg0: i32) -> (i32, i32) {
    %c0_i32 = arith.constant 0 : i32
    %c0_i32_0 = arith.constant 0 : i32
    return %arg0, %c0_i32 : i32, i32
  }
}

</mosaic_0001>

<bundles_post_ra>
// kernel: vb_dirichlet_nnx_forward.1
= control target key start
LH: loop header
LB: loop body
LE: loop exit
PB: predicated region body
PF: predicated region fallthrough
CT: control target
= control target key end

     0   :  { %vm73_vm0 = vcmask 523264   ;;  %s2977_s1 = inlined_call_operand.vmem [shape: f32[64,128], index: 1, kind: input, shape index: {}]   ;;  %s2978_s0 = inlined_call_operand.vmem [shape: f32[256,64], index: 0, kind: input, shape index: {}]   ;;  %s2979_s3 = inlined_call_operand.vmem [shape: f32[128,128], index: 3, kind: input, shape index: {}]   ;;  %s2980_s5 = inlined_call_operand.vmem [shape: f32[128,128], index: 5, kind: input, shape index: {}]   ;;  %s2981_s2 = inlined_call_operand.vmem [shape: f32[1,128], index: 2, kind: input, shape index: {}]   ;;  %s2982_s4 = inlined_call_operand.vmem [shape: f32[1,128], index: 4, kind: input, shape index: {}]   ;;  %s2983_s6 = inlined_call_operand.vmem [shape: f32[1,128], index: 6, kind: input, shape index: {}]   ;;  %s2984_s7 = inlined_call_operand.vmem [shape: f32[256,128], index: 7, kind: output, shape index: {}]  }
   0x1   :  { %v65_v0 = vld [vmem:[%s2977_s1 + $0x38] sm:$0xff]  ;;  %v64_v1 = vld [vmem:[%s2977_s1 + $0x30] sm:$0xff]  ;;  %v63_v2 = vld [vmem:[%s2977_s1 + $0x28] sm:$0xff] }
   0x2   :  { %1674 = vmatprep.subr.mxu0 %v65_v0  ;;  %1898 = vmatprep.subr.mxu1 %v65_v0  ;;  %v26_v3 = vld [vmem:[%s2978_s0] sm:$0xff]  ;;  %v61_v5 = vld [vmem:[%s2977_s1 + $0x18] sm:$0xff]  ;;  %v60_v6 = vld [vmem:[%s2977_s1 + $0x10] sm:$0xff] }
   0x3   :  { %1675 = vmatpush3.msra.mxu0 %v65_v0  ;;  %1906 = vmatpush3.msra.mxu1 %v65_v0  ;;  %v62_v4 = vld [vmem:[%s2977_s1 + $0x20] sm:$0xff]  ;;  %v59_v7 = vld [vmem:[%s2977_s1 + $0x8] sm:$0xff]  ;;  %v28_v10 = vld [vmem:[%s2978_s0 + $0x10] sm:$0xff] }
   0x4   :  { %1676 = vmatprep.subr.mxu0 %v64_v1  ;;  %1690 = vmatprep.mubr.msk.f32.mxu0 %vm73_vm0, %v26_v3  ;;  %v58_v8 = vld [vmem:[%s2977_s1] sm:$0xff]  ;;  %v27_v9 = vld [vmem:[%s2978_s0 + $0x8] sm:$0xff]  ;;  %v442_v13 = vld [vmem:[%s2979_s3 + $0x78] sm:$0xff] }
   0x5   :  { %1677 = vmatpush3.msra.mxu0 %v64_v1  ;;  %1899 = vmatprep.subr.mxu1 %v64_v1  ;;  %v42_v11 = vld [vmem:[%s2978_s0 + $0x80] sm:$0xff]  ;;  %v43_v12 = vld [vmem:[%s2978_s0 + $0x88] sm:$0xff]  ;;  %v44_v14 = vld [vmem:[%s2978_s0 + $0x90] sm:$0xff] }
   0x6   :  { %1678 = vmatprep.subr.mxu0 %v63_v2  ;;  %1907 = vmatpush3.msra.mxu1 %v64_v1  ;;  %v29_v15 = vld [vmem:[%s2978_s0 + $0x18] sm:$0xff]  ;;  %v441_v16 = vld [vmem:[%s2979_s3 + $0x70] sm:$0xff]  ;;  %v30_v17 = vld [vmem:[%s2978_s0 + $0x20] sm:$0xff] }
   0x7   :  { %1679 = vmatpush3.msra.mxu0 %v63_v2  ;;  %1900 = vmatprep.subr.mxu1 %v63_v2  ;;  %v45_v18 = vld [vmem:[%s2978_s0 + $0x98] sm:$0xff]  ;;  %v440_v19 = vld [vmem:[%s2979_s3 + $0x68] sm:$0xff]  ;;  %v46_v20 = vld [vmem:[%s2978_s0 + $0xa0] sm:$0xff] }
   0x8   :  { %1680 = vmatprep.subr.mxu0 %v62_v4  ;;  %1908 = vmatpush3.msra.mxu1 %v63_v2  ;;  %v31_v21 = vld [vmem:[%s2978_s0 + $0x28] sm:$0xff]  ;;  %v439_v22 = vld [vmem:[%s2979_s3 + $0x60] sm:$0xff]  ;;  %v32_v23 = vld [vmem:[%s2978_s0 + $0x30] sm:$0xff] }
   0x9   :  { %1681 = vmatpush3.msra.mxu0 %v62_v4  ;;  %1901 = vmatprep.subr.mxu1 %v62_v4  ;;  %v47_v24 = vld [vmem:[%s2978_s0 + $0xa8] sm:$0xff]  ;;  %v438_v25 = vld [vmem:[%s2979_s3 + $0x58] sm:$0xff]  ;;  %v48_v26 = vld [vmem:[%s2978_s0 + $0xb0] sm:$0xff] }
   0xa   :  { %1682 = vmatprep.subr.mxu0 %v61_v5  ;;  %1909 = vmatpush3.msra.mxu1 %v62_v4  ;;  %v33_v27 = vld [vmem:[%s2978_s0 + $0x38] sm:$0xff]  ;;  %v437_v28 = vld [vmem:[%s2979_s3 + $0x50] sm:$0xff]  ;;  %v34_v29 = vld [vmem:[%s2978_s0 + $0x40] sm:$0xff] }
   0xb   :  { %1683 = vmatpush3.msra.mxu0 %v61_v5  ;;  %1902 = vmatprep.subr.mxu1 %v61_v5  ;;  %v49_v30 = vld [vmem:[%s2978_s0 + $0xb8] sm:$0xff]  ;;  %v436_v31 = vld [vmem:[%s2979_s3 + $0x48] sm:$0xff]  ;;  %v50_v32 = vld [vmem:[%s2978_s0 + $0xc0] sm:$0xff] }
   0xc   :  { %1684 = vmatprep.subr.mxu0 %v60_v6  ;;  %1910 = vmatpush3.msra.mxu1 %v61_v5  ;;  %v35_v33 = vld [vmem:[%s2978_s0 + $0x48] sm:$0xff]  ;;  %v435_v34 = vld [vmem:[%s2979_s3 + $0x40] sm:$0xff]  ;;  %v36_v35 = vld [vmem:[%s2978_s0 + $0x50] sm:$0xff] }
   0xd   :  { %1685 = vmatpush3.msra.mxu0 %v60_v6  ;;  %1903 = vmatprep.subr.mxu1 %v60_v6  ;;  %v51_v36 = vld [vmem:[%s2978_s0 + $0xc8] sm:$0xff]  ;;  %v434_v37 = vld [vmem:[%s2979_s3 + $0x38] sm:$0xff]  ;;  %v52_v38 = vld [vmem:[%s2978_s0 + $0xd0] sm:$0xff] }
   0xe   :  { %1686 = vmatprep.subr.mxu0 %v59_v7  ;;  %1911 = vmatpush3.msra.mxu1 %v60_v6  ;;  %v37_v39 = vld [vmem:[%s2978_s0 + $0x58] sm:$0xff]  ;;  %v433_v40 = vld [vmem:[%s2979_s3 + $0x30] sm:$0xff]  ;;  %v38_v41 = vld [vmem:[%s2978_s0 + $0x60] sm:$0xff] }
   0xf   :  { %1687 = vmatpush3.msra.mxu0 %v59_v7  ;;  %1904 = vmatprep.subr.mxu1 %v59_v7  ;;  %v53_v42 = vld [vmem:[%s2978_s0 + $0xd8] sm:$0xff]  ;;  %v432_v43 = vld [vmem:[%s2979_s3 + $0x28] sm:$0xff]  ;;  %v54_v44 = vld [vmem:[%s2978_s0 + $0xe0] sm:$0xff] }
  0x10   :  { %1688 = vmatprep.subr.mxu0 %v58_v8  ;;  %1912 = vmatpush3.msra.mxu1 %v59_v7  ;;  %v39_v45 = vld [vmem:[%s2978_s0 + $0x68] sm:$0xff]  ;;  %v431_v46 = vld [vmem:[%s2979_s3 + $0x20] sm:$0xff]  ;;  %v40_v47 = vld [vmem:[%s2978_s0 + $0x70] sm:$0xff] }
  0x11   :  { %1689 = vmatpush3.msra.mxu0 %v58_v8  ;;  %1905 = vmatprep.subr.mxu1 %v58_v8  ;;  %v55_v48 = vld [vmem:[%s2978_s0 + $0xe8] sm:$0xff]  ;;  %v430_v49 = vld [vmem:[%s2979_s3 + $0x18] sm:$0xff]  ;;  %v56_v50 = vld [vmem:[%s2978_s0 + $0xf0] sm:$0xff] }
  0x12   :  { %1691 = vmatmul.mubr.msk.f32.vlgmr.msra.gmra.mxu0 %vm73_vm0, %v27_v9  ;;  %1913 = vmatpush3.msra.mxu1 %v58_v8  ;;  %v41_v51 = vld [vmem:[%s2978_s0 + $0x78] sm:$0xff]  ;;  %v429_v53 = vld [vmem:[%s2979_s3 + $0x10] sm:$0xff]  ;;  %v428_v54 = vld [vmem:[%s2979_s3 + $0x8] sm:$0xff] }
  0x13   :  { %1693 = vmatprep.mubr.msk.f32.mxu0 %vm73_vm0, %v28_v10  ;;  %1714 = vmatprep.mubr.msk.f32.mxu1 %vm73_vm0, %v42_v11  ;;  %v57_v52 = vld [vmem:[%s2978_s0 + $0xf8] sm:$0xff]  ;;  %v427_v55 = vld [vmem:[%s2979_s3] sm:$0xff]  ;;  %v721_v57 = vld [vmem:[%s2980_s5 + $0x70] sm:$0xff] }
  0x14   :  { %1715 = vmatmul.mubr.msk.f32.vlgmr.msra.gmra.mxu1 %vm73_vm0, %v43_v12  ;;  %1738 = vmatprep.subr.mxu1 %v442_v13  ;;  %v722_v56 = vld [vmem:[%s2980_s5 + $0x78] sm:$0xff]  ;;  %v720_v58 = vld [vmem:[%s2980_s5 + $0x68] sm:$0xff]  ;;  %v719_v59 = vld [vmem:[%s2980_s5 + $0x60] sm:$0xff] }
  0x15   :  { %1717 = vmatprep.mubr.msk.f32.mxu1 %vm73_vm0, %v44_v14  ;;  %1739 = vmatpush3.msra.mxu1 %v442_v13  ;;  %v718_v60 = vld [vmem:[%s2980_s5 + $0x58] sm:$0xff]  ;;  %v717_v61 = vld [vmem:[%s2980_s5 + $0x50] sm:$0xff]  ;;  %v716_v62 = vld [vmem:[%s2980_s5 + $0x48] sm:$0xff] }
  0x16   :  { %1694 = vmatmul.mubr.msk.f32.gmra.mxu0 %vm73_vm0, %v29_v15  ;;  %1740 = vmatprep.subr.mxu1 %v441_v16  ;;  %v715_v63 = vld [vmem:[%s2980_s5 + $0x40] sm:$0xff]  ;;  %v714_v0 = vld [vmem:[%s2980_s5 + $0x38] sm:$0xff]  ;;  %v713_v1 = vld [vmem:[%s2980_s5 + $0x30] sm:$0xff] }
  0x17   :  { %1696 = vmatprep.mubr.msk.f32.mxu0 %vm73_vm0, %v30_v17  ;;  %1741 = vmatpush3.msra.mxu1 %v441_v16  ;;  %v712_v2 = vld [vmem:[%s2980_s5 + $0x28] sm:$0xff]  ;;  %v711_v3 = vld [vmem:[%s2980_s5 + $0x20] sm:$0xff]  ;;  %v710_v4 = vld [vmem:[%s2980_s5 + $0x18] sm:$0xff] }
  0x18   :  { %1718 = vmatmul.mubr.msk.f32.gmra.mxu1 %vm73_vm0, %v45_v18  ;;  %1742 = vmatprep.subr.mxu1 %v440_v19  ;;  %v2325_v5 = vld [vmem:[%s2981_s2] ss:$0 sm:$0xff] }
  0x19   :  { %1720 = vmatprep.mubr.msk.f32.mxu1 %vm73_vm0, %v46_v20  ;;  %1743 = vmatpush3.msra.mxu1 %v440_v19 }
  0x1a   :  { %1697 = vmatmul.mubr.msk.f32.gmra.mxu0 %vm73_vm0, %v31_v21  ;;  %1744 = vmatprep.subr.mxu1 %v439_v22 }
  0x1b   :  { %1699 = vmatprep.mubr.msk.f32.mxu0 %vm73_vm0, %v32_v23  ;;  %1745 = vmatpush3.msra.mxu1 %v439_v22 }
  0x1c   :  { %1721 = vmatmul.mubr.msk.f32.gmra.mxu1 %vm73_vm0, %v47_v24  ;;  %1746 = vmatprep.subr.mxu1 %v438_v25 }
  0x1d   :  { %1723 = vmatprep.mubr.msk.f32.mxu1 %vm73_vm0, %v48_v26  ;;  %1747 = vmatpush3.msra.mxu1 %v438_v25 }
  0x1e   :  { %1700 = vmatmul.mubr.msk.f32.gmra.mxu0 %vm73_vm0, %v33_v27  ;;  %1748 = vmatprep.subr.mxu1 %v437_v28 }
  0x1f   :  { %1702 = vmatprep.mubr.msk.f32.mxu0 %vm73_vm0, %v34_v29  ;;  %1749 = vmatpush3.msra.mxu1 %v437_v28 }
  0x20   :  { %1724 = vmatmul.mubr.msk.f32.gmra.mxu1 %vm73_vm0, %v49_v30  ;;  %1750 = vmatprep.subr.mxu1 %v436_v31 }
  0x21   :  { %1726 = vmatprep.mubr.msk.f32.mxu1 %vm73_vm0, %v50_v32  ;;  %1751 = vmatpush3.msra.mxu1 %v436_v31 }
  0x22   :  { %1703 = vmatmul.mubr.msk.f32.gmra.mxu0 %vm73_vm0, %v35_v33  ;;  %1752 = vmatprep.subr.mxu1 %v435_v34 }
  0x23   :  { %1705 = vmatprep.mubr.msk.f32.mxu0 %vm73_vm0, %v36_v35  ;;  %1753 = vmatpush3.msra.mxu1 %v435_v34 }
  0x24   :  { %1727 = vmatmul.mubr.msk.f32.gmra.mxu1 %vm73_vm0, %v51_v36  ;;  %1754 = vmatprep.subr.mxu1 %v434_v37 }
  0x25   :  { %1729 = vmatprep.mubr.msk.f32.mxu1 %vm73_vm0, %v52_v38  ;;  %1755 = vmatpush3.msra.mxu1 %v434_v37 }
  0x26   :  { %1706 = vmatmul.mubr.msk.f32.gmra.mxu0 %vm73_vm0, %v37_v39  ;;  %1756 = vmatprep.subr.mxu1 %v433_v40 }
  0x27   :  { %1708 = vmatprep.mubr.msk.f32.mxu0 %vm73_vm0, %v38_v41  ;;  %1757 = vmatpush3.msra.mxu1 %v433_v40 }
  0x28   :  { %1730 = vmatmul.mubr.msk.f32.gmra.mxu1 %vm73_vm0, %v53_v42  ;;  %1758 = vmatprep.subr.mxu1 %v432_v43 }
  0x29   :  { %1732 = vmatprep.mubr.msk.f32.mxu1 %vm73_vm0, %v54_v44  ;;  %1759 = vmatpush3.msra.mxu1 %v432_v43 }
  0x2a   :  { %1709 = vmatmul.mubr.msk.f32.gmra.mxu0 %vm73_vm0, %v39_v45  ;;  %1760 = vmatprep.subr.mxu1 %v431_v46 }
  0x2b   :  { %1711 = vmatprep.mubr.msk.f32.mxu0 %vm73_vm0, %v40_v47  ;;  %1761 = vmatpush3.msra.mxu1 %v431_v46 }
  0x2c   :  { %1733 = vmatmul.mubr.msk.f32.gmra.mxu1 %vm73_vm0, %v55_v48  ;;  %1762 = vmatprep.subr.mxu1 %v430_v49 }
  0x2d   :  { %1735 = vmatprep.mubr.msk.f32.mxu1 %vm73_vm0, %v56_v50  ;;  %1763 = vmatpush3.msra.mxu1 %v430_v49 }
  0x2e   :  { %1712 = vmatmul.mubr.msk.f32.gmra.mxu0 %vm73_vm0, %v41_v51  ;;  %1764 = vmatprep.subr.mxu1 %v429_v53 }
  0x2f   :  { %1765 = vmatpush3.msra.mxu1 %v429_v53  ;;  %1818 = vmatprep.subr.mxu0 %v722_v56 }
  0x30   :  { %1736 = vmatmul.mubr.msk.f32.gmra.mxu1 %vm73_vm0, %v57_v52  ;;  %1766 = vmatprep.subr.mxu1 %v428_v54 }
  0x31   :  { %1767 = vmatpush3.msra.mxu1 %v428_v54  ;;  %1819 = vmatpush3.msra.mxu0 %v722_v56 }
  0x32   :  { %1768 = vmatprep.subr.mxu1 %v427_v55  ;;  %1820 = vmatprep.subr.mxu0 %v721_v57 }
  0x33   :  { %1769 = vmatpush3.msra.mxu1 %v427_v55  ;;  %1821 = vmatpush3.msra.mxu0 %v721_v57 }
  0x34   :  { %1822 = vmatprep.subr.mxu0 %v720_v58 }
  0x35   :  { %1823 = vmatpush3.msra.mxu0 %v720_v58 }
  0x36   :  { %1824 = vmatprep.subr.mxu0 %v719_v59 }
  0x37   :  { %1825 = vmatpush3.msra.mxu0 %v719_v59 }
  0x38   :  { %1826 = vmatprep.subr.mxu0 %v718_v60 }
  0x39   :  { %1827 = vmatpush3.msra.mxu0 %v718_v60 }
  0x3a   :  { %1828 = vmatprep.subr.mxu0 %v717_v61 }
  0x3b   :  { %1829 = vmatpush3.msra.mxu0 %v717_v61 }
  0x3c   :  { %1830 = vmatprep.subr.mxu0 %v716_v62 }
  0x3d   :  { %1831 = vmatpush3.msra.mxu0 %v716_v62 }
  0x3e   :  { %1832 = vmatprep.subr.mxu0 %v715_v63 }
  0x3f   :  { %1833 = vmatpush3.msra.mxu0 %v715_v63 }
  0x40   :  { %1834 = vmatprep.subr.mxu0 %v714_v0 }
  0x41   :  { %1835 = vmatpush3.msra.mxu0 %v714_v0 }
  0x42   :  { %1836 = vmatprep.subr.mxu0 %v713_v1 }
  0x43   :  { %1837 = vmatpush3.msra.mxu0 %v713_v1 }
  0x44   :  { %1838 = vmatprep.subr.mxu0 %v712_v2 }
  0x45   :  { %1839 = vmatpush3.msra.mxu0 %v712_v2 }
  0x46   :  { %1840 = vmatprep.subr.mxu0 %v711_v3 }
  0x47   :  { %1841 = vmatpush3.msra.mxu0 %v711_v3 }
  0x48   :  { %1842 = vmatprep.subr.mxu0 %v710_v4 }
  0x49   :  { %1843 = vmatpush3.msra.mxu0 %v710_v4 }
  0xd2   :  { %v1692_v6 = vpop.f32.mrf.mxu0 }
  0xd3   :  { %v242_v7 = vadd.f32 %v1692_v6, %v2325_v5 }
  0xd4   :  { %v236_v8 = vpop.f32.mrf.mxu0  ;;  %v2328_v9 = vpop.f32.mrf.mxu1 }
  0xd5   :  { %v237_v10 = vadd.f32 %v2325_v5, %v236_v8  ;;  %v396_v14 = vmax.f32 %v242_v7, 0.0  ;;  %v322_v3 = vadd.f32 %v2328_v9, %v2325_v5 }
  0xd6   :  { %v1695_v11 = vpop.f32.mrf.mxu0  ;;  %v316_v12 = vpop.f32.mrf.mxu1 }
  0xd7   :  { %v395_v13 = vmax.f32 %v237_v10, 0.0  ;;  %v252_v15 = vadd.f32 %v1695_v11, %v2325_v5  ;;  %v317_v57 = vadd.f32 %v2325_v5, %v316_v12  ;;  %v412_v8 = vmax.f32 %v322_v3, 0.0 }
  0xd8   :  { %v246_v16 = vpop.f32.mrf.mxu0  ;;  %v2332_v17 = vpop.f32.mrf.mxu1 }
  0xd9   :  { %v247_v18 = vadd.f32 %v2325_v5, %v246_v16  ;;  %1770 = vmatprep.mubr.f32.mxu1 %v395_v13  ;;  %v398_v22 = vmax.f32 %v252_v15, 0.0  ;;  %v411_v0 = vmax.f32 %v317_v57, 0.0  ;;  %v332_v10 = vadd.f32 %v2332_v17, %v2325_v5 }
  0xda   :  { %v1698_v19 = vpop.f32.mrf.mxu0  ;;  %1771 = vmatmul.mubr.f32.vlgmr.msra.gmra.mxu1 %v396_v14  ;;  %v326_v20 = vpop.f32.mrf.mxu1 }
  0xdb   :  { %v397_v21 = vmax.f32 %v247_v18, 0.0  ;;  %v262_v23 = vadd.f32 %v1698_v19, %v2325_v5  ;;  %v327_v1 = vadd.f32 %v2325_v5, %v326_v20  ;;  %v414_v14 = vmax.f32 %v332_v10, 0.0 }
  0xdc   :  { %v256_v24 = vpop.f32.mrf.mxu0  ;;  %v2336_v25 = vpop.f32.mrf.mxu1 }
  0xdd   :  { %v257_v26 = vadd.f32 %v2325_v5, %v256_v24  ;;  %1773 = vmatprep.mubr.f32.mxu1 %v397_v21  ;;  %v400_v29 = vmax.f32 %v262_v23, 0.0  ;;  %v413_v6 = vmax.f32 %v327_v1, 0.0  ;;  %v342_v9 = vadd.f32 %v2336_v25, %v2325_v5 }
  0xde   :  { %v1701_v27 = vpop.f32.mrf.mxu0  ;;  %1774 = vmatmul.mubr.f32.gmra.mxu1 %v398_v22  ;;  %v336_v32 = vpop.f32.mrf.mxu1 }
  0xdf   :  { %v399_v28 = vmax.f32 %v257_v26, 0.0  ;;  %v272_v30 = vadd.f32 %v1701_v27, %v2325_v5  ;;  %v337_v7 = vadd.f32 %v2325_v5, %v336_v32  ;;  %v416_v19 = vmax.f32 %v342_v9, 0.0 }
  0xe0   :  { %v266_v31 = vpop.f32.mrf.mxu0  ;;  %v1725_v39 = vpop.f32.mrf.mxu1 }
  0xe1   :  { %v267_v33 = vadd.f32 %v2325_v5, %v266_v31  ;;  %1776 = vmatprep.mubr.f32.mxu1 %v399_v28  ;;  %v402_v36 = vmax.f32 %v272_v30, 0.0  ;;  %v415_v12 = vmax.f32 %v337_v7, 0.0  ;;  %v352_v20 = vadd.f32 %v1725_v39, %v2325_v5  ;;  %v709_v39 = vld [vmem:[%s2980_s5 + $0x10] sm:$0xff] }
  0xe2   :  { %v1704_v34 = vpop.f32.mrf.mxu0  ;;  %1777 = vmatmul.mubr.f32.gmra.mxu1 %v400_v29  ;;  %v346_v46 = vpop.f32.mrf.mxu1  ;;  %1844 = vmatprep.subr.mxu0 %v709_v39 }
  0xe3   :  { %v401_v35 = vmax.f32 %v267_v33, 0.0  ;;  %v282_v37 = vadd.f32 %v1704_v34, %v2325_v5  ;;  %v347_v13 = vadd.f32 %v2325_v5, %v346_v46  ;;  %v418_v23 = vmax.f32 %v352_v20, 0.0  ;;  %1845 = vmatpush3.msra.mxu0 %v709_v39 }
  0xe4   :  { %v276_v38 = vpop.f32.mrf.mxu0  ;;  %v1728_v53 = vpop.f32.mrf.mxu1 }
  0xe5   :  { %v277_v40 = vadd.f32 %v2325_v5, %v276_v38  ;;  %1779 = vmatprep.mubr.f32.mxu1 %v401_v35  ;;  %v404_v43 = vmax.f32 %v282_v37, 0.0  ;;  %v417_v16 = vmax.f32 %v347_v13, 0.0  ;;  %v362_v24 = vadd.f32 %v1728_v53, %v2325_v5 }
  0xe6   :  { %v1707_v41 = vpop.f32.mrf.mxu0  ;;  %1780 = vmatmul.mubr.f32.gmra.mxu1 %v402_v36  ;;  %v356_v61 = vpop.f32.mrf.mxu1 }
  0xe7   :  { %v403_v42 = vmax.f32 %v277_v40, 0.0  ;;  %v292_v44 = vadd.f32 %v1707_v41, %v2325_v5  ;;  %v357_v18 = vadd.f32 %v2325_v5, %v356_v61  ;;  %v420_v28 = vmax.f32 %v362_v24, 0.0  ;;  %v708_v40 = vld [vmem:[%s2980_s5 + $0x8] sm:$0xff]  ;;  %v2380_v41 = vld [vmem:[%s2982_s4] ss:$0 sm:$0xff] }
  0xe8   :  { %v286_v45 = vpop.f32.mrf.mxu0  ;;  %v1731_v4 = vpop.f32.mrf.mxu1  ;;  %1846 = vmatprep.subr.mxu0 %v708_v40 }
  0xe9   :  { %v287_v47 = vadd.f32 %v2325_v5, %v286_v45  ;;  %1782 = vmatprep.mubr.f32.mxu1 %v403_v42  ;;  %v406_v50 = vmax.f32 %v292_v44, 0.0  ;;  %v419_v21 = vmax.f32 %v357_v18, 0.0  ;;  %v372_v29 = vadd.f32 %v1731_v4, %v2325_v5  ;;  %1847 = vmatpush3.msra.mxu0 %v708_v40 }
  0xea   :  { %v1710_v48 = vpop.f32.mrf.mxu0  ;;  %1783 = vmatmul.mubr.f32.gmra.mxu1 %v404_v43  ;;  %v366_v11 = vpop.f32.mrf.mxu1 }
  0xeb   :  { %v405_v49 = vmax.f32 %v287_v47, 0.0  ;;  %v302_v51 = vadd.f32 %v1710_v48, %v2325_v5  ;;  %v367_v22 = vadd.f32 %v2325_v5, %v366_v11  ;;  %v422_v33 = vmax.f32 %v372_v29, 0.0 }
  0xec   :  { %v296_v52 = vpop.f32.mrf.mxu0  ;;  %v1734_v15 = vpop.f32.mrf.mxu1 }
  0xed   :  { %v297_v54 = vadd.f32 %v2325_v5, %v296_v52  ;;  %1785 = vmatprep.mubr.f32.mxu1 %v405_v49  ;;  %v408_v58 = vmax.f32 %v302_v51, 0.0  ;;  %v421_v25 = vmax.f32 %v367_v22, 0.0  ;;  %v382_v34 = vadd.f32 %v1734_v15, %v2325_v5 }
  0xee   :  { %v1713_v55 = vpop.f32.mrf.mxu0  ;;  %1786 = vmatmul.mubr.f32.gmra.mxu1 %v406_v50  ;;  %v376_v17 = vpop.f32.mrf.mxu1 }
  0xef   :  { %v407_v56 = vmax.f32 %v297_v54, 0.0  ;;  %v312_v59 = vadd.f32 %v1713_v55, %v2325_v5  ;;  %v377_v27 = vadd.f32 %v2325_v5, %v376_v17  ;;  %v424_v36 = vmax.f32 %v382_v34, 0.0 }
  0xf0   :  { %v306_v60 = vpop.f32.mrf.mxu0  ;;  %v1737_v26 = vpop.f32.mrf.mxu1 }
  0xf1   :  { %v307_v62 = vadd.f32 %v2325_v5, %v306_v60  ;;  %1788 = vmatprep.mubr.f32.mxu1 %v407_v56  ;;  %v410_v2 = vmax.f32 %v312_v59, 0.0  ;;  %v423_v31 = vmax.f32 %v377_v27, 0.0  ;;  %v392_v37 = vadd.f32 %v1737_v26, %v2325_v5 }
  0xf2   :  { %1789 = vmatmul.mubr.f32.gmra.mxu1 %v408_v58  ;;  %v386_v30 = vpop.f32.mrf.mxu1 }
  0xf3   :  { %v409_v63 = vmax.f32 %v307_v62, 0.0  ;;  %v387_v32 = vadd.f32 %v2325_v5, %v386_v30  ;;  %v426_v38 = vmax.f32 %v392_v37, 0.0  ;;  %v707_v5 = vld [vmem:[%s2980_s5] sm:$0xff] }
  0xf4   :  { %1848 = vmatprep.subr.mxu0 %v707_v5 }
  0xf5   :  { %1791 = vmatprep.mubr.f32.mxu1 %v409_v63  ;;  %v425_v35 = vmax.f32 %v387_v32, 0.0  ;;  %1849 = vmatpush3.msra.mxu0 %v707_v5 }
  0xf6   :  { %1792 = vmatmul.mubr.f32.gmra.mxu1 %v410_v2 }
  0xf7   :  { %1794 = vmatprep.mubr.f32.mxu1 %v411_v0 }
  0xfa   :  { %1795 = vmatmul.mubr.f32.gmra.mxu1 %v412_v8 }
  0xfb   :  { %1797 = vmatprep.mubr.f32.mxu1 %v413_v6 }
  0xfe   :  { %1798 = vmatmul.mubr.f32.gmra.mxu1 %v414_v14 }
  0xff   :  { %1800 = vmatprep.mubr.f32.mxu1 %v415_v12 }
 0x102   :  { %1801 = vmatmul.mubr.f32.gmra.mxu1 %v416_v19 }
 0x103   :  { %1803 = vmatprep.mubr.f32.mxu1 %v417_v16 }
 0x106   :  { %1804 = vmatmul.mubr.f32.gmra.mxu1 %v418_v23 }
 0x107   :  { %1806 = vmatprep.mubr.f32.mxu1 %v419_v21 }
 0x10a   :  { %1807 = vmatmul.mubr.f32.gmra.mxu1 %v420_v28 }
 0x10b   :  { %1809 = vmatprep.mubr.f32.mxu1 %v421_v25 }
 0x10e   :  { %1810 = vmatmul.mubr.f32.gmra.mxu1 %v422_v33 }
 0x10f   :  { %1812 = vmatprep.mubr.f32.mxu1 %v423_v31 }
 0x112   :  { %1813 = vmatmul.mubr.f32.gmra.mxu1 %v424_v36 }
 0x113   :  { %1815 = vmatprep.mubr.f32.mxu1 %v425_v35 }
 0x116   :  { %1816 = vmatmul.mubr.f32.gmra.mxu1 %v426_v38 }
 0x19a   :  { %v1772_v42 = vpop.f32.mrf.mxu1 }
 0x19b   :  { %v522_v43 = vadd.f32 %v1772_v42, %v2380_v41 }
 0x19c   :  { %v516_v44 = vpop.f32.mrf.mxu1 }
 0x19d   :  { %v517_v45 = vadd.f32 %v2380_v41, %v516_v44  ;;  %v676_v48 = vmax.f32 %v522_v43, 0.0 }
 0x19e   :  { %v1775_v46 = vpop.f32.mrf.mxu1 }
 0x19f   :  { %v675_v47 = vmax.f32 %v517_v45, 0.0  ;;  %v532_v49 = vadd.f32 %v1775_v46, %v2380_v41 }
 0x1a0   :  { %v526_v50 = vpop.f32.mrf.mxu1 }
 0x1a1   :  { %v527_v51 = vadd.f32 %v2380_v41, %v526_v50  ;;  %1850 = vmatprep.mubr.f32.mxu0 %v675_v47  ;;  %v678_v54 = vmax.f32 %v532_v49, 0.0 }
 0x1a2   :  { %v1778_v52 = vpop.f32.mrf.mxu1  ;;  %1851 = vmatmul.mubr.f32.vlgmr.msra.gmra.mxu0 %v676_v48 }
 0x1a3   :  { %v677_v53 = vmax.f32 %v527_v51, 0.0  ;;  %v542_v55 = vadd.f32 %v1778_v52, %v2380_v41 }
 0x1a4   :  { %v536_v56 = vpop.f32.mrf.mxu1 }
 0x1a5   :  { %v537_v57 = vadd.f32 %v2380_v41, %v536_v56  ;;  %1853 = vmatprep.mubr.f32.mxu0 %v677_v53  ;;  %v680_v60 = vmax.f32 %v542_v55, 0.0 }
 0x1a6   :  { %v1781_v58 = vpop.f32.mrf.mxu1  ;;  %1854 = vmatmul.mubr.f32.gmra.mxu0 %v678_v54 }
 0x1a7   :  { %v679_v59 = vmax.f32 %v537_v57, 0.0  ;;  %v552_v61 = vadd.f32 %v1781_v58, %v2380_v41 }
 0x1a8   :  { %v546_v62 = vpop.f32.mrf.mxu1 }
 0x1a9   :  { %v547_v63 = vadd.f32 %v2380_v41, %v546_v62  ;;  %1856 = vmatprep.mubr.f32.mxu0 %v679_v59  ;;  %v682_v2 = vmax.f32 %v552_v61, 0.0 }
 0x1aa   :  { %v1784_v0 = vpop.f32.mrf.mxu1  ;;  %1857 = vmatmul.mubr.f32.gmra.mxu0 %v680_v60 }
 0x1ab   :  { %v681_v1 = vmax.f32 %v547_v63, 0.0  ;;  %v562_v3 = vadd.f32 %v1784_v0, %v2380_v41 }
 0x1ac   :  { %v556_v4 = vpop.f32.mrf.mxu1 }
 0x1ad   :  { %v557_v6 = vadd.f32 %v2380_v41, %v556_v4  ;;  %1859 = vmatprep.mubr.f32.mxu0 %v681_v1  ;;  %v684_v10 = vmax.f32 %v562_v3, 0.0 }
 0x1ae   :  { %v1787_v7 = vpop.f32.mrf.mxu1  ;;  %1860 = vmatmul.mubr.f32.gmra.mxu0 %v682_v2 }
 0x1af   :  { %v683_v8 = vmax.f32 %v557_v6, 0.0  ;;  %v572_v11 = vadd.f32 %v1787_v7, %v2380_v41 }
 0x1b0   :  { %v566_v12 = vpop.f32.mrf.mxu1 }
 0x1b1   :  { %v567_v13 = vadd.f32 %v2380_v41, %v566_v12  ;;  %1862 = vmatprep.mubr.f32.mxu0 %v683_v8  ;;  %v686_v15 = vmax.f32 %v572_v11, 0.0 }
 0x1b2   :  { %v1790_v14 = vpop.f32.mrf.mxu1  ;;  %1863 = vmatmul.mubr.f32.gmra.mxu0 %v684_v10 }
 0x1b3   :  { %v685_v9 = vmax.f32 %v567_v13, 0.0  ;;  %v582_v16 = vadd.f32 %v1790_v14, %v2380_v41  ;;  %v2417_v13 = vld [vmem:[%s2983_s6] ss:$0 sm:$0xff] }
 0x1b4   :  { %v576_v18 = vpop.f32.mrf.mxu1 }
 0x1b5   :  { %v577_v19 = vadd.f32 %v2380_v41, %v576_v18  ;;  %1865 = vmatprep.mubr.f32.mxu0 %v685_v9  ;;  %v688_v21 = vmax.f32 %v582_v16, 0.0 }
 0x1b6   :  { %v1793_v20 = vpop.f32.mrf.mxu1  ;;  %1866 = vmatmul.mubr.f32.gmra.mxu0 %v686_v15 }
 0x1b7   :  { %v687_v17 = vmax.f32 %v577_v19, 0.0  ;;  %v592_v22 = vadd.f32 %v1793_v20, %v2380_v41 }
 0x1b8   :  { %v586_v23 = vpop.f32.mrf.mxu1 }
 0x1b9   :  { %v587_v24 = vadd.f32 %v2380_v41, %v586_v23  ;;  %1868 = vmatprep.mubr.f32.mxu0 %v687_v17  ;;  %v690_v27 = vmax.f32 %v592_v22, 0.0 }
 0x1ba   :  { %v1796_v26 = vpop.f32.mrf.mxu1  ;;  %1869 = vmatmul.mubr.f32.gmra.mxu0 %v688_v21 }
 0x1bb   :  { %v689_v25 = vmax.f32 %v587_v24, 0.0  ;;  %v602_v28 = vadd.f32 %v1796_v26, %v2380_v41 }
 0x1bc   :  { %v596_v29 = vpop.f32.mrf.mxu1 }
 0x1bd   :  { %v597_v30 = vadd.f32 %v2380_v41, %v596_v29  ;;  %1871 = vmatprep.mubr.f32.mxu0 %v689_v25  ;;  %v692_v33 = vmax.f32 %v602_v28, 0.0 }
 0x1be   :  { %v1799_v31 = vpop.f32.mrf.mxu1  ;;  %1872 = vmatmul.mubr.f32.gmra.mxu0 %v690_v27 }
 0x1bf   :  { %v691_v32 = vmax.f32 %v597_v30, 0.0  ;;  %v612_v34 = vadd.f32 %v1799_v31, %v2380_v41 }
 0x1c0   :  { %v606_v35 = vpop.f32.mrf.mxu1 }
 0x1c1   :  { %v607_v36 = vadd.f32 %v2380_v41, %v606_v35  ;;  %1874 = vmatprep.mubr.f32.mxu0 %v691_v32  ;;  %v694_v39 = vmax.f32 %v612_v34, 0.0 }
 0x1c2   :  { %v1802_v37 = vpop.f32.mrf.mxu1  ;;  %1875 = vmatmul.mubr.f32.gmra.mxu0 %v692_v33 }
 0x1c3   :  { %v693_v38 = vmax.f32 %v607_v36, 0.0  ;;  %v622_v40 = vadd.f32 %v1802_v37, %v2380_v41 }
 0x1c4   :  { %v616_v5 = vpop.f32.mrf.mxu1 }
 0x1c5   :  { %v617_v42 = vadd.f32 %v2380_v41, %v616_v5  ;;  %1877 = vmatprep.mubr.f32.mxu0 %v693_v38  ;;  %v696_v45 = vmax.f32 %v622_v40, 0.0 }
 0x1c6   :  { %v1805_v43 = vpop.f32.mrf.mxu1  ;;  %1878 = vmatmul.mubr.f32.gmra.mxu0 %v694_v39 }
 0x1c7   :  { %v695_v44 = vmax.f32 %v617_v42, 0.0  ;;  %v632_v46 = vadd.f32 %v1805_v43, %v2380_v41 }
 0x1c8   :  { %v626_v47 = vpop.f32.mrf.mxu1 }
 0x1c9   :  { %v627_v48 = vadd.f32 %v2380_v41, %v626_v47  ;;  %1880 = vmatprep.mubr.f32.mxu0 %v695_v44  ;;  %v698_v51 = vmax.f32 %v632_v46, 0.0 }
 0x1ca   :  { %v1808_v49 = vpop.f32.mrf.mxu1  ;;  %1881 = vmatmul.mubr.f32.gmra.mxu0 %v696_v45 }
 0x1cb   :  { %v697_v50 = vmax.f32 %v627_v48, 0.0  ;;  %v642_v52 = vadd.f32 %v1808_v49, %v2380_v41 }
 0x1cc   :  { %v636_v53 = vpop.f32.mrf.mxu1 }
 0x1cd   :  { %v637_v54 = vadd.f32 %v2380_v41, %v636_v53  ;;  %1883 = vmatprep.mubr.f32.mxu0 %v697_v50  ;;  %v700_v57 = vmax.f32 %v642_v52, 0.0 }
 0x1ce   :  { %v1811_v55 = vpop.f32.mrf.mxu1  ;;  %1884 = vmatmul.mubr.f32.gmra.mxu0 %v698_v51 }
 0x1cf   :  { %v699_v56 = vmax.f32 %v637_v54, 0.0  ;;  %v652_v58 = vadd.f32 %v1811_v55, %v2380_v41 }
 0x1d0   :  { %v646_v59 = vpop.f32.mrf.mxu1 }
 0x1d1   :  { %v647_v60 = vadd.f32 %v2380_v41, %v646_v59  ;;  %1886 = vmatprep.mubr.f32.mxu0 %v699_v56  ;;  %v702_v63 = vmax.f32 %v652_v58, 0.0 }
 0x1d2   :  { %v1814_v61 = vpop.f32.mrf.mxu1  ;;  %1887 = vmatmul.mubr.f32.gmra.mxu0 %v700_v57 }
 0x1d3   :  { %v701_v62 = vmax.f32 %v647_v60, 0.0  ;;  %v662_v0 = vadd.f32 %v1814_v61, %v2380_v41 }
 0x1d4   :  { %v656_v1 = vpop.f32.mrf.mxu1 }
 0x1d5   :  { %v657_v2 = vadd.f32 %v2380_v41, %v656_v1  ;;  %1889 = vmatprep.mubr.f32.mxu0 %v701_v62  ;;  %v704_v6 = vmax.f32 %v662_v0, 0.0 }
 0x1d6   :  { %v1817_v3 = vpop.f32.mrf.mxu1  ;;  %1890 = vmatmul.mubr.f32.gmra.mxu0 %v702_v63 }
 0x1d7   :  { %v703_v4 = vmax.f32 %v657_v2, 0.0  ;;  %v672_v7 = vadd.f32 %v1817_v3, %v2380_v41 }
 0x1d8   :  { %v666_v8 = vpop.f32.mrf.mxu1 }
 0x1d9   :  { %v667_v10 = vadd.f32 %v2380_v41, %v666_v8  ;;  %1892 = vmatprep.mubr.f32.mxu0 %v703_v4  ;;  %v706_v12 = vmax.f32 %v672_v7, 0.0 }
 0x1da   :  { %1893 = vmatmul.mubr.f32.gmra.mxu0 %v704_v6 }
 0x1db   :  { %v705_v11 = vmax.f32 %v667_v10, 0.0 }
 0x1dd   :  { %1895 = vmatprep.mubr.f32.mxu0 %v705_v11 }
 0x1de   :  { %1896 = vmatmul.mubr.f32.gmra.mxu0 %v706_v12 }
 0x262   :  { %v1852_v14 = vpop.f32.mrf.mxu0 }
 0x263   :  { %v2420_v9 = vadd.f32 %v1852_v14, %v2417_v13 }
 0x264   :  { %v796_v15 = vpop.f32.mrf.mxu0 }
 0x265   :  { %v988_v16 = vand.u32 2147483647, %v2420_v9  ;;  %v2424_v41 = vadd.f32 %v2417_v13, %v796_v15  ;;  %v956_v6 = vmax.f32 %v2420_v9, 0.0 }
 0x266   :  { %v1855_v18 = vpop.f32.mrf.mxu0 }
 0x267   :  { %v1020_v19 = vsub.f32 0.0, %v988_v16  ;;  %v987_v20 = vand.u32 2147483647, %v2424_v41  ;;  %v2428_v17 = vadd.f32 %v1855_v18, %v2417_v13  ;;  %v955_v8 = vmax.f32 %v2424_v41, 0.0 }
 0x268   :  { %v806_v21 = vpop.f32.mrf.mxu0 }
 0x269   :  { %v1053_v22 = vmul.f32 1.442695, %v1020_v19  ;;  %v1019_v23 = vsub.f32 0.0, %v987_v20  ;;  %v990_v24 = vand.u32 2147483647, %v2428_v17  ;;  %v2432_v26 = vadd.f32 %v2417_v13, %v806_v21 }
 0x26a   :  { %v1858_v25 = vpop.f32.mrf.mxu0  ;;  %v958_v10 = vmax.f32 %v2428_v17, 0.0 }
 0x26b   :  { %1914 = vpow2.f32 %v1053_v22  ;;  %v1051_v27 = vmul.f32 1.442695, %v1019_v23  ;;  %v1022_v28 = vsub.f32 0.0, %v990_v24  ;;  %v2435_v29 = vadd.f32 %v1858_v25, %v2417_v13 }
 0x26c   :  { %v989_v30 = vand.u32 2147483647, %v2432_v26  ;;  %v816_v31 = vpop.f32.mrf.mxu0  ;;  %v957_v19 = vmax.f32 %v2432_v26, 0.0 }
 0x26d   :  { %1916 = vpow2.f32 %v1051_v27  ;;  %v1057_v32 = vmul.f32 1.442695, %v1022_v28  ;;  %v992_v33 = vand.u32 2147483647, %v2435_v29  ;;  %v2440_v35 = vadd.f32 %v2417_v13, %v816_v31 }
 0x26e   :  { %v1021_v34 = vsub.f32 0.0, %v989_v30  ;;  %v1861_v36 = vpop.f32.mrf.mxu0  ;;  %v960_v20 = vmax.f32 %v2435_v29, 0.0 }
 0x26f   :  { %1918 = vpow2.f32 %v1057_v32  ;;  %v1024_v37 = vsub.f32 0.0, %v992_v33  ;;  %v2443_v38 = vadd.f32 %v1861_v36, %v2417_v13  ;;  %v991_v40 = vand.u32 2147483647, %v2440_v35 }
 0x270   :  { %v1055_v39 = vmul.f32 1.442695, %v1021_v34  ;;  %v826_v5 = vpop.f32.mrf.mxu0  ;;  %v959_v27 = vmax.f32 %v2440_v35, 0.0 }
 0x271   :  { %v1061_v42 = vmul.f32 1.442695, %v1024_v37  ;;  %v994_v43 = vand.u32 2147483647, %v2443_v38  ;;  %v2448_v44 = vadd.f32 %v2417_v13, %v826_v5  ;;  %v1023_v45 = vsub.f32 0.0, %v991_v40 }
 0x272   :  { %1920 = vpow2.f32 %v1055_v39  ;;  %v1864_v46 = vpop.f32.mrf.mxu0  ;;  %v962_v31 = vmax.f32 %v2443_v38, 0.0 }
 0x273   :  { %1922 = vpow2.f32 %v1061_v42  ;;  %v1026_v47 = vsub.f32 0.0, %v994_v43  ;;  %v993_v48 = vand.u32 2147483647, %v2448_v44  ;;  %v1059_v49 = vmul.f32 1.442695, %v1023_v45 }
 0x274   :  { %v2452_v50 = vadd.f32 %v1864_v46, %v2417_v13  ;;  %v836_v51 = vpop.f32.mrf.mxu0  ;;  %v961_v32 = vmax.f32 %v2448_v44, 0.0 }
 0x275   :  { %v1065_v52 = vmul.f32 1.442695, %v1026_v47  ;;  %v1025_v53 = vsub.f32 0.0, %v993_v48  ;;  %v2455_v54 = vadd.f32 %v2417_v13, %v836_v51  ;;  %1924 = vpow2.f32 %v1059_v49 }
 0x276   :  { %v996_v55 = vand.u32 2147483647, %v2452_v50  ;;  %v1867_v60 = vpop.f32.mrf.mxu0 }
 0x277   :  { %1926 = vpow2.f32 %v1065_v52  ;;  %v1063_v56 = vmul.f32 1.442695, %v1025_v53  ;;  %v995_v57 = vand.u32 2147483647, %v2455_v54  ;;  %v2460_v3 = vadd.f32 %v1867_v60, %v2417_v13 }
 0x278   :  { %v1915_v58 = vpop.eup %1914  ;;  %v1028_v59 = vsub.f32 0.0, %v996_v55  ;;  %v846_v12 = vpop.f32.mrf.mxu0 }
 0x279   :  { %v1124_v61 = vadd.f32 1.0, %v1915_v58  ;;  %1928 = vpow2.f32 %v1063_v56  ;;  %v1127_v63 = vmul.f32 -0.5, %v1915_v58  ;;  %v1027_v1 = vsub.f32 0.0, %v995_v57 }
 0x27a   :  { %v1917_v62 = vpop.eup %1916  ;;  %v1069_v0 = vmul.f32 1.442695, %v1028_v59  ;;  %v1130_v15 = vand.u32 2147483647, %v1915_v58  ;;  %v998_v21 = vand.u32 2147483647, %v2460_v3  ;;  %v2474_v33 = vpop.f32.mrf.mxu0  ;;  %v2481_v42 = vadd.f32 %v2417_v13, %v846_v12 }
 0x27b   :  { %1930 = vlog2.f32 %v1124_v61  ;;  %v1115_v2 = vadd.f32 1.0, %v1917_v62  ;;  %v1067_v7 = vmul.f32 1.442695, %v1027_v1  ;;  %v1128_v14 = vadd.f32 1.0, %v1127_v63 }
 0x27c   :  { %v1919_v4 = vpop.eup %1918  ;;  %1932 = vpow2.f32 %v1069_v0  ;;  %v1118_v16 = vmul.f32 -0.5, %v1917_v62  ;;  %v1121_v28 = vand.u32 2147483647, %v1917_v62  ;;  %vm2476_vm1 = vcmp.lt.f32.partialorder %v1130_v15, 0.0004427343  ;;  %v2488_v55 = vpop.f32.mrf.mxu0 }
 0x27d   :  { %1934 = vlog2.f32 %v1115_v2  ;;  %v1142_v11 = vadd.f32 1.0, %v1919_v4  ;;  %v1145_v23 = vmul.f32 -0.5, %v1919_v4  ;;  %v1129_v34 = vmul.f32 %v1915_v58, %v1128_v14 }
 0x27e   :  { %1936 = vpow2.f32 %v1067_v7  ;;  %v1119_v37 = vadd.f32 1.0, %v1118_v16  ;;  %v1148_v40 = vand.u32 2147483647, %v1919_v4  ;;  %v1030_v5 = vsub.f32 0.0, %v998_v21  ;;  %v2505_v21 = vpop.f32.mrf.mxu0 }
 0x27f   :  { %v1921_v18 = vpop.eup %1920  ;;  %1938 = vlog2.f32 %v1142_v11  ;;  %v1146_v45 = vadd.f32 1.0, %v1145_v23  ;;  %vm2484_vm2 = vcmp.lt.f32.partialorder %v1121_v28, 0.0004427343  ;;  %v997_v63 = vand.u32 2147483647, %v2481_v42 }
 0x280   :  { %v2468_v22 = vpop.eup %1922  ;;  %v1133_v24 = vadd.f32 1.0, %v1921_v18  ;;  %v1136_v25 = vmul.f32 -0.5, %v1921_v18  ;;  %v1139_v51 = vand.u32 2147483647, %v1921_v18  ;;  %v1120_v57 = vmul.f32 %v1917_v62, %v1119_v37 }
 0x281   :  { %v1160_v30 = vadd.f32 1.0, %v2468_v22  ;;  %v1163_v47 = vmul.f32 -0.5, %v2468_v22  ;;  %v1166_v58 = vand.u32 2147483647, %v2468_v22  ;;  %v1073_v61 = vmul.f32 1.442695, %v1030_v5 }
 0x282   :  { %1940 = vlog2.f32 %v1133_v24  ;;  %v1925_v39 = vpop.eup %1924  ;;  %v1137_v46 = vadd.f32 1.0, %v1136_v25  ;;  %v1147_v1 = vmul.f32 %v1919_v4, %v1146_v45  ;;  %vm2495_vm3 = vcmp.lt.f32.partialorder %v1148_v40, 0.0004427343 }
 0x283   :  { %1942 = vlog2.f32 %v1160_v30  ;;  %v1151_v48 = vadd.f32 1.0, %v1925_v39  ;;  %v1154_v52 = vmul.f32 -0.5, %v1925_v39  ;;  %v1164_v11 = vadd.f32 1.0, %v1163_v47 }
 0x284   :  { %v1927_v43 = vpop.eup %1926  ;;  %v1138_v7 = vmul.f32 %v1921_v18, %v1137_v46  ;;  %vm2501_vm4 = vcmp.lt.f32.partialorder %v1139_v51, 0.0004427343  ;;  %v1157_v16 = vand.u32 2147483647, %v1925_v39  ;;  %vm2507_vm5 = vcmp.lt.f32.partialorder %v1166_v58, 0.0004427343  ;;  %v2528_v58 = vpop.f32.mrf.mxu0 }
 0x285   :  { %v1178_v53 = vadd.f32 1.0, %v1927_v43  ;;  %1944 = vlog2.f32 %v1151_v48  ;;  %v1181_v59 = vmul.f32 -0.5, %v1927_v43  ;;  %v1155_v15 = vadd.f32 1.0, %v1154_v52 }
 0x286   :  { %v2490_v56 = vpop.eup %1928  ;;  %v1184_v18 = vand.u32 2147483647, %v1927_v43  ;;  %v1029_v5 = vsub.f32 0.0, %v997_v63  ;;  %v1165_v47 = vmul.f32 %v2468_v22, %v1164_v11  ;;  %vm2523_vm6 = vcmp.lt.f32.partialorder %v1157_v16, 0.0004427343 }
 0x287   :  { %1946 = vlog2.f32 %v1178_v53  ;;  %v1169_v60 = vadd.f32 1.0, %v2490_v56  ;;  %v1182_v24 = vadd.f32 1.0, %v1181_v59  ;;  %v1172_v25 = vmul.f32 -0.5, %v2490_v56 }
 0x288   :  { %v1931_v0 = vpop.eup %1930  ;;  %v1175_v48 = vand.u32 2147483647, %v2490_v56  ;;  %v1156_v53 = vmul.f32 %v1925_v39, %v1155_v15  ;;  %vm2532_vm7 = vcmp.lt.f32.partialorder %v1184_v18, 0.0004427343  ;;  %v2551_v2 = vadd.f32 %v2474_v33, %v2417_v13 }
 0x289   :  { %v2499_v12 = vpop.eup %1932  ;;  %v1126_v62 = vmul.f32 0.6931472, %v1931_v0  ;;  %1948 = vlog2.f32 %v1169_v60  ;;  %v1183_v22 = vmul.f32 %v1927_v43, %v1182_v24  ;;  %v1173_v60 = vadd.f32 1.0, %v1172_v25 }
 0x28a   :  { %v1935_v23 = vpop.eup %1934  ;;  %v1196_v28 = vadd.f32 1.0, %v2499_v12  ;;  %1950 = vpow2.f32 %v1073_v61  ;;  %v1199_v49 = vmul.f32 -0.5, %v2499_v12  ;;  %v1071_v61 = vmul.f32 1.442695, %v1029_v5 }
 0x28b   :  { %v2513_v30 = vpop.eup %1936  ;;  %v1132_v37 = vsel %vm2476_vm1, %v1129_v34, %v1126_v62  ;;  %v1117_v40 = vmul.f32 0.6931472, %v1935_v23  ;;  %vm2544_vm8 = vcmp.lt.f32.partialorder %v1175_v48, 0.0004427343  ;;  %v2553_v62 = vpop.f32.mrf.mxu0  ;;  %v2562_v16 = vadd.f32 %v2417_v13, %v2488_v55 }
 0x28c   :  { %v1939_v45 = vpop.eup %1938  ;;  %v1404_v46 = vadd.f32 %v1132_v37, %v956_v6  ;;  %1952 = vlog2.f32 %v1196_v28  ;;  %v1187_v34 = vadd.f32 1.0, %v2513_v30  ;;  %v1200_v15 = vadd.f32 1.0, %v1199_v49 }
 0x28d   :  { %v1123_v51 = vsel %vm2484_vm2, %v1120_v57, %v1117_v40  ;;  %v1144_v52 = vmul.f32 0.6931472, %v1939_v45  ;;  %v1174_v18 = vmul.f32 %v2490_v56, %v1173_v60  ;;  %v1000_v25 = vand.u32 2147483647, %v2551_v2  ;;  %v876_v40 = vpop.f32.mrf.mxu0 }
 0x28e   :  { %v1436_v9 = vmax.f32 %v1404_v46, 1.1754944e-38  ;;  %v1403_v6 = vadd.f32 %v1123_v51, %v955_v8  ;;  %1954 = vlog2.f32 %v1187_v34  ;;  %v1190_v14 = vmul.f32 -0.5, %v2513_v30 }
 0x28f   :  { %v1941_v39 = vpop.eup %1940  ;;  %v1150_v57 = vsel %vm2495_vm3, %v1147_v1, %v1144_v52  ;;  %v1202_v1 = vand.u32 2147483647, %v2499_v12  ;;  %1956 = vpow2.f32 %v1071_v61  ;;  %v999_v26 = vand.u32 2147483647, %v2562_v16  ;;  %v1879_v59 = vpop.f32.mrf.mxu0 }
 0x290   :  { %v1943_v63 = vpop.eup %1942  ;;  %1468 = vst [vmem:[%s2984_s7 + $0x8] sm:$0xff] %v1436_v9  ;;  %v1435_v41 = vmax.f32 %v1403_v6, 1.1754944e-38  ;;  %v1406_v8 = vadd.f32 %v1150_v57, %v958_v10  ;;  %v1135_v43 = vmul.f32 0.6931472, %v1941_v39  ;;  %v1032_v37 = vsub.f32 0.0, %v1000_v25 }
 0x291   :  { %v1162_v11 = vmul.f32 0.6931472, %v1943_v63  ;;  %v2579_v56 = vadd.f32 %v2505_v21, %v2417_v13  ;;  %v1201_v29 = vmul.f32 %v2499_v12, %v1200_v15  ;;  %v1193_v51 = vand.u32 2147483647, %v2513_v30 }
 0x292   :  { %1467 = vst [vmem:[%s2984_s7] sm:$0xff] %v1435_v41  ;;  %v1438_v17 = vmax.f32 %v1406_v8, 1.1754944e-38  ;;  %v1141_v10 = vsel %vm2501_vm4, %v1138_v7, %v1135_v43  ;;  %v1945_v23 = vpop.eup %1944  ;;  %v1077_v36 = vmul.f32 1.442695, %v1032_v37  ;;  %v2607_v38 = vadd.f32 %v2417_v13, %v2528_v58  ;;  %v886_v43 = vpop.f32.mrf.mxu0 }
 0x293   :  { %v1405_v33 = vadd.f32 %v1141_v10, %v957_v19  ;;  %v1168_v24 = vsel %vm2507_vm5, %v1165_v47, %v1162_v11  ;;  %v1153_v7 = vmul.f32 0.6931472, %v1945_v23  ;;  %v1002_v35 = vand.u32 2147483647, %v2579_v56 }
 0x294   :  { %v1947_v28 = vpop.eup %1946  ;;  %1470 = vst [vmem:[%s2984_s7 + $0x18] sm:$0xff] %v1438_v17  ;;  %v1408_v55 = vadd.f32 %v1168_v24, %v960_v20  ;;  %v1031_v20 = vsub.f32 0.0, %v999_v26  ;;  %vm1203_vm9 = vcmp.lt.f32.partialorder %v1202_v1, 0.0004427343  ;;  %v963_v63 = vmax.f32 %v2455_v54, 0.0 }
 0x295   :  { %v1437_v19 = vmax.f32 %v1405_v33, 1.1754944e-38  ;;  %v1180_v4 = vmul.f32 0.6931472, %v1947_v28  ;;  %v1159_v46 = vsel %vm2523_vm6, %v1156_v53, %v1153_v7  ;;  %v1191_v53 = vadd.f32 1.0, %v1190_v14 }
 0x296   :  { %v1949_v5 = vpop.eup %1948  ;;  %v1440_v45 = vmax.f32 %v1408_v55, 1.1754944e-38  ;;  %v1407_v47 = vadd.f32 %v1159_v46, %v959_v27  ;;  %v1034_v60 = vsub.f32 0.0, %v1002_v35  ;;  %vm1194_vm10 = vcmp.lt.f32.partialorder %v1193_v51, 0.0004427343 }
 0x297   :  { %1469 = vst [vmem:[%s2984_s7 + $0x10] sm:$0xff] %v1437_v19  ;;  %v1186_v21 = vsel %vm2532_vm7, %v1183_v22, %v1180_v4  ;;  %v1171_v48 = vmul.f32 0.6931472, %v1949_v5  ;;  %v2592_v52 = vpop.eup %1950  ;;  %v1075_v22 = vmul.f32 1.442695, %v1031_v20  ;;  %v1192_v8 = vmul.f32 %v2513_v30, %v1191_v53 }
 0x298   :  { %1472 = vst [vmem:[%s2984_s7 + $0x28] sm:$0xff] %v1440_v45  ;;  %v1410_v12 = vadd.f32 %v1186_v21, %v962_v31  ;;  %v1439_v34 = vmax.f32 %v1407_v47, 1.1754944e-38  ;;  %v1214_v6 = vadd.f32 1.0, %v2592_v52  ;;  %v964_v31 = vmax.f32 %v2452_v50, 0.0 }
 0x299   :  { %v1953_v27 = vpop.eup %1952  ;;  %v1177_v9 = vsel %vm2544_vm8, %v1174_v18, %v1171_v48  ;;  %v1081_v0 = vmul.f32 1.442695, %v1034_v60  ;;  %v1001_v11 = vand.u32 2147483647, %v2607_v38  ;;  %v2626_v54 = vadd.f32 %v2553_v62, %v2417_v13  ;;  %v1882_v18 = vpop.f32.mrf.mxu0 }
 0x29a   :  { %v1442_v49 = vmax.f32 %v1410_v12, 1.1754944e-38  ;;  %v1409_v39 = vadd.f32 %v1177_v9, %v961_v32  ;;  %v1198_v57 = vmul.f32 0.6931472, %v1953_v27  ;;  %1471 = vst [vmem:[%s2984_s7 + $0x20] sm:$0xff] %v1439_v34  ;;  %1958 = vlog2.f32 %v1214_v6 }
 0x29b   :  { %v1955_v61 = vpop.eup %1954  ;;  %1960 = vpow2.f32 %v1077_v36  ;;  %v2630_v10 = vadd.f32 %v2417_v13, %v876_v40  ;;  %v1217_v23 = vmul.f32 -0.5, %v2592_v52  ;;  %v1033_v33 = vsub.f32 0.0, %v1001_v11  ;;  %v896_v20 = vpop.f32.mrf.mxu0 }
 0x29c   :  { %1474 = vst [vmem:[%s2984_s7 + $0x38] sm:$0xff] %v1442_v49  ;;  %v1441_v44 = vmax.f32 %v1409_v39, 1.1754944e-38  ;;  %v1204_v32 = vsel %vm1203_vm9, %v1201_v29, %v1198_v57  ;;  %v1189_v41 = vmul.f32 0.6931472, %v1955_v61  ;;  %1962 = vpow2.f32 %v1075_v22  ;;  %v2618_v50 = vpop.eup %1956 }
 0x29d   :  { %v1412_v58 = vadd.f32 %v1204_v32, %v964_v31  ;;  %v1205_v30 = vadd.f32 1.0, %v2618_v50  ;;  %1964 = vpow2.f32 %v1081_v0  ;;  %v966_v24 = vmax.f32 %v2460_v3, 0.0  ;;  %v1885_v60 = vpop.f32.mrf.mxu0 }
 0x29e   :  { %1473 = vst [vmem:[%s2984_s7 + $0x30] sm:$0xff] %v1441_v44  ;;  %v1195_v17 = vsel %vm1194_vm10, %v1192_v8, %v1189_v41  ;;  %v1004_v62 = vand.u32 2147483647, %v2626_v54  ;;  %v965_v28 = vmax.f32 %v2481_v42, 0.0  ;;  %v968_v55 = vmax.f32 %v2551_v2, 0.0 }
 0x29f   :  { %v1444_v1 = vmax.f32 %v1412_v58, 1.1754944e-38  ;;  %v1411_v15 = vadd.f32 %v1195_v17, %v963_v63  ;;  %1966 = vlog2.f32 %v1205_v30  ;;  %v1079_v7 = vmul.f32 1.442695, %v1033_v33 }
 0x2a0   :  { %v967_v14 = vmax.f32 %v2562_v16, 0.0  ;;  %v1036_v26 = vsub.f32 0.0, %v1004_v62  ;;  %v1003_v19 = vand.u32 2147483647, %v2630_v10  ;;  %v2643_v4 = vadd.f32 %v1879_v59, %v2417_v13 }
 0x2a1   :  { %1476 = vst [vmem:[%s2984_s7 + $0x48] sm:$0xff] %v1444_v1  ;;  %v1443_v25 = vmax.f32 %v1411_v15, 1.1754944e-38  ;;  %v1218_v3 = vadd.f32 1.0, %v1217_v23  ;;  %1968 = vpow2.f32 %v1079_v7  ;;  %v2649_v37 = vadd.f32 %v2417_v13, %v886_v43 }
 0x2a2   :  { %v2652_v40 = vadd.f32 %v1882_v18, %v2417_v13  ;;  %v1208_v5 = vmul.f32 -0.5, %v2618_v50  ;;  %v1085_v45 = vmul.f32 1.442695, %v1036_v26  ;;  %v1035_v46 = vsub.f32 0.0, %v1003_v19 }
 0x2a3   :  { %1475 = vst [vmem:[%s2984_s7 + $0x40] sm:$0xff] %v1443_v25  ;;  %v1006_v29 = vand.u32 2147483647, %v2643_v4  ;;  %v1220_v47 = vand.u32 2147483647, %v2592_v52  ;;  %v1219_v35 = vmul.f32 %v2592_v52, %v1218_v3  ;;  %v970_v27 = vmax.f32 %v2579_v56, 0.0  ;;  %v906_v25 = vpop.f32.mrf.mxu0 }
 0x2a4   :  { %v1211_v21 = vand.u32 2147483647, %v2618_v50  ;;  %v1005_v48 = vand.u32 2147483647, %v2649_v37  ;;  %1970 = vpow2.f32 %v1085_v45  ;;  %v1083_v51 = vmul.f32 1.442695, %v1035_v46 }
 0x2a5   :  { %v1038_v12 = vsub.f32 0.0, %v1006_v29  ;;  %v1008_v53 = vand.u32 2147483647, %v2652_v40  ;;  %v969_v34 = vmax.f32 %v2607_v38, 0.0  ;;  %v2664_v9 = vadd.f32 %v2417_v13, %v896_v20 }
 0x2a6   :  { %v1209_v59 = vadd.f32 1.0, %v1208_v5  ;;  %1972 = vpow2.f32 %v1083_v51  ;;  %v1037_v49 = vsub.f32 0.0, %v1005_v48  ;;  %vm1221_vm11 = vcmp.lt.f32.partialorder %v1220_v47, 0.0004427343 }
 0x2a7   :  { %v1959_v36 = vpop.eup %1958  ;;  %vm2670_vm12 = vcmp.lt.f32.partialorder %v1211_v21, 0.0004427343  ;;  %v972_v31 = vmax.f32 %v2626_v54, 0.0  ;;  %v1089_v32 = vmul.f32 1.442695, %v1038_v12  ;;  %v1040_v63 = vsub.f32 0.0, %v1008_v53 }
 0x2a8   :  { %v2666_v6 = vpop.eup %1960  ;;  %v1216_v22 = vmul.f32 0.6931472, %v1959_v36  ;;  %v971_v41 = vmax.f32 %v2630_v10, 0.0  ;;  %v1007_v8 = vand.u32 2147483647, %v2664_v9  ;;  %v1210_v0 = vmul.f32 %v2618_v50, %v1209_v59 }
 0x2a9   :  { %v2668_v39 = vpop.eup %1962  ;;  %v1232_v52 = vadd.f32 1.0, %v2666_v6  ;;  %v1087_v11 = vmul.f32 1.442695, %v1037_v49  ;;  %v2683_v1 = vadd.f32 %v1885_v60, %v2417_v13  ;;  %v974_v23 = vmax.f32 %v2643_v4, 0.0 }
 0x2aa   :  { %v1222_v61 = vsel %vm1221_vm11, %v1219_v35, %v1216_v22  ;;  %v1223_v44 = vadd.f32 1.0, %v2668_v39  ;;  %v2679_v43 = vpop.eup %1964  ;;  %v973_v33 = vmax.f32 %v2649_v37, 0.0  ;;  %v976_v62 = vmax.f32 %v2652_v40, 0.0 }
 0x2ab   :  { %v1414_v58 = vadd.f32 %v1222_v61, %v966_v24  ;;  %1974 = vlog2.f32 %v1232_v52  ;;  %v1250_v15 = vadd.f32 1.0, %v2679_v43  ;;  %v1093_v18 = vmul.f32 1.442695, %v1040_v63  ;;  %v1888_v63 = vpop.f32.mrf.mxu0 }
 0x2ac   :  { %1976 = vlog2.f32 %v1223_v44  ;;  %v1967_v17 = vpop.eup %1966  ;;  %v1235_v50 = vmul.f32 -0.5, %v2666_v6  ;;  %v1238_v7 = vand.u32 2147483647, %v2666_v6  ;;  %v1039_v26 = vsub.f32 0.0, %v1007_v8 }
 0x2ad   :  { %v1446_v30 = vmax.f32 %v1414_v58, 1.1754944e-38  ;;  %v1207_v24 = vmul.f32 0.6931472, %v1967_v17  ;;  %1978 = vpow2.f32 %v1089_v32  ;;  %v1226_v5 = vmul.f32 -0.5, %v2668_v39 }
 0x2ae   :  { %1980 = vlog2.f32 %v1250_v15  ;;  %v1969_v19 = vpop.eup %1968  ;;  %v1010_v45 = vand.u32 2147483647, %v2683_v1  ;;  %v975_v20 = vmax.f32 %v2664_v9, 0.0  ;;  %v2702_v47 = vadd.f32 %v2417_v13, %v906_v25 }
 0x2af   :  { %1478 = vst [vmem:[%s2984_s7 + $0x58] sm:$0xff] %v1446_v30  ;;  %v1213_v3 = vsel %vm2670_vm12, %v1210_v0, %v1207_v24  ;;  %1982 = vpow2.f32 %v1087_v11  ;;  %v1241_v29 = vadd.f32 1.0, %v1969_v19  ;;  %v1253_v21 = vmul.f32 -0.5, %v2679_v43 }
 0x2b0   :  { %v1413_v46 = vadd.f32 %v1213_v3, %v965_v28  ;;  %1984 = vpow2.f32 %v1093_v18  ;;  %v1091_v48 = vmul.f32 1.442695, %v1039_v26  ;;  %v1042_v51 = vsub.f32 0.0, %v1010_v45 }
 0x2b1   :  { %v2705_v12 = vpop.eup %1970  ;;  %v1229_v36 = vand.u32 2147483647, %v2668_v39  ;;  %1986 = vlog2.f32 %v1241_v29  ;;  %v1244_v35 = vmul.f32 -0.5, %v1969_v19  ;;  %v1236_v42 = vadd.f32 1.0, %v1235_v50 }
 0x2b2   :  { %v1445_v53 = vmax.f32 %v1413_v46, 1.1754944e-38  ;;  %vm2708_vm13 = vcmp.lt.f32.partialorder %v1238_v7, 0.0004427343  ;;  %v1227_v22 = vadd.f32 1.0, %v1226_v5  ;;  %v1268_v59 = vadd.f32 1.0, %v2705_v12  ;;  %v916_v46 = vpop.f32.mrf.mxu0 }
 0x2b3   :  { %v2713_v49 = vpop.eup %1972  ;;  %v1256_v57 = vand.u32 2147483647, %v2679_v43  ;;  %1988 = vpow2.f32 %v1091_v48  ;;  %v1097_v52 = vmul.f32 1.442695, %v1042_v51  ;;  %v1009_v60 = vand.u32 2147483647, %v2702_v47 }
 0x2b4   :  { %1477 = vst [vmem:[%s2984_s7 + $0x50] sm:$0xff] %v1445_v53  ;;  %v1254_v61 = vadd.f32 1.0, %v1253_v21  ;;  %v1247_v44 = vand.u32 2147483647, %v1969_v19  ;;  %1990 = vlog2.f32 %v1268_v59  ;;  %v1259_v32 = vadd.f32 1.0, %v2713_v49 }
 0x2b5   :  { %v1245_v58 = vadd.f32 1.0, %v1244_v35  ;;  %v1271_v8 = vmul.f32 -0.5, %v2705_v12  ;;  %1992 = vpow2.f32 %v1097_v52  ;;  %v1041_v0 = vsub.f32 0.0, %v1009_v60 }
 0x2b6   :  { %v1237_v17 = vmul.f32 %v2666_v6, %v1236_v42  ;;  %vm2723_vm14 = vcmp.lt.f32.partialorder %v1229_v36, 0.0004427343  ;;  %1994 = vlog2.f32 %v1259_v32  ;;  %v978_v15 = vmax.f32 %v2683_v1, 0.0  ;;  %v1891_v32 = vpop.f32.mrf.mxu0 }
 0x2b7   :  { %v1228_v25 = vmul.f32 %v2668_v39, %v1227_v22  ;;  %vm2729_vm15 = vcmp.lt.f32.partialorder %v1256_v57, 0.0004427343  ;;  %v1274_v7 = vand.u32 2147483647, %v2705_v12  ;;  %v1255_v6 = vmul.f32 %v2679_v43, %v1254_v61 }
 0x2b8   :  { %v1975_v11 = vpop.eup %1974  ;;  %vm2735_vm0 = vcmp.lt.f32.partialorder %v1247_v44, 0.0004427343  ;;  %v1262_v5 = vmul.f32 -0.5, %v2713_v49  ;;  %v1095_v45 = vmul.f32 1.442695, %v1041_v0  ;;  %v1246_v21 = vmul.f32 %v1969_v19, %v1245_v58 }
 0x2b9   :  { %v1977_v24 = vpop.eup %1976  ;;  %v1234_v18 = vmul.f32 0.6931472, %v1975_v11  ;;  %v1272_v48 = vadd.f32 1.0, %v1271_v8  ;;  %v1265_v51 = vand.u32 2147483647, %v2713_v49  ;;  %v2751_v42 = vadd.f32 %v1888_v63, %v2417_v13 }
 0x2ba   :  { %v1225_v26 = vmul.f32 0.6931472, %v1977_v24  ;;  %v2740_v29 = vpop.eup %1978  ;;  %vm2757_vm1 = vcmp.lt.f32.partialorder %v1274_v7, 0.0004427343  ;;  %1996 = vpow2.f32 %v1095_v45  ;;  %v2762_v2 = vadd.f32 %v2417_v13, %v916_v46 }
 0x2bb   :  { %v1240_v39 = vsel %vm2708_vm13, %v1237_v17, %v1234_v18  ;;  %v1981_v53 = vpop.eup %1980  ;;  %v1286_v35 = vadd.f32 1.0, %v2740_v29  ;;  %v1263_v57 = vadd.f32 1.0, %v1262_v5  ;;  %v1289_v44 = vmul.f32 -0.5, %v2740_v29  ;;  %v926_v5 = vpop.f32.mrf.mxu0 }
 0x2bc   :  { %v1416_v43 = vadd.f32 %v1240_v39, %v968_v55  ;;  %v1231_v36 = vsel %vm2723_vm14, %v1228_v25, %v1225_v26  ;;  %v2753_v22 = vpop.eup %1982  ;;  %v1252_v28 = vmul.f32 0.6931472, %v1981_v53  ;;  %vm2776_vm2 = vcmp.lt.f32.partialorder %v1265_v51, 0.0004427343 }
 0x2bd   :  { %v1415_v19 = vadd.f32 %v1231_v36, %v967_v14  ;;  %1998 = vlog2.f32 %v1286_v35  ;;  %v1277_v52 = vadd.f32 1.0, %v2753_v22  ;;  %v2765_v60 = vpop.eup %1984  ;;  %v1273_v14 = vmul.f32 %v2705_v12, %v1272_v48 }
 0x2be   :  { %v1448_v55 = vmax.f32 %v1416_v43, 1.1754944e-38  ;;  %v1258_v16 = vsel %vm2729_vm15, %v1255_v6, %v1252_v28  ;;  %v1987_v63 = vpop.eup %1986  ;;  %v1012_v0 = vand.u32 2147483647, %v2751_v42  ;;  %v1292_v11 = vand.u32 2147483647, %v2740_v29 }
 0x2bf   :  { %v1447_v61 = vmax.f32 %v1415_v19, 1.1754944e-38  ;;  %v1418_v58 = vadd.f32 %v1258_v16, %v970_v27  ;;  %2000 = vlog2.f32 %v1277_v52  ;;  %v1243_v12 = vmul.f32 0.6931472, %v1987_v63 }
 0x2c0   :  { %1480 = vst [vmem:[%s2984_s7 + $0x68] sm:$0xff] %v1448_v55  ;;  %v1280_v17 = vmul.f32 -0.5, %v2753_v22  ;;  %v1304_v30 = vadd.f32 1.0, %v2765_v60  ;;  %v2787_v56 = vpop.eup %1988  ;;  %v1264_v24 = vmul.f32 %v2713_v49, %v1263_v57  ;;  %v1011_v18 = vand.u32 2147483647, %v2762_v2  ;;  %v1894_v55 = vpop.f32.mrf.mxu0 }
 0x2c1   :  { %1479 = vst [vmem:[%s2984_s7 + $0x60] sm:$0xff] %v1447_v61  ;;  %v1450_v27 = vmax.f32 %v1418_v58, 1.1754944e-38  ;;  %v2792_v25 = vadd.f32 %v1891_v32, %v2417_v13  ;;  %v1991_v50 = vpop.eup %1990  ;;  %v1249_v7 = vsel %vm2735_vm0, %v1246_v21, %v1243_v12  ;;  %v1290_v26 = vadd.f32 1.0, %v1289_v44 }
 0x2c2   :  { %2002 = vlog2.f32 %v1304_v30  ;;  %v1307_v6 = vmul.f32 -0.5, %v2765_v60  ;;  %v2797_v45 = vpop.eup %1992  ;;  %v1417_v49 = vadd.f32 %v1249_v7, %v969_v34  ;;  %v1270_v46 = vmul.f32 0.6931472, %v1991_v50  ;;  %v936_v12 = vpop.f32.mrf.mxu0 }
 0x2c3   :  { %1482 = vst [vmem:[%s2984_s7 + $0x78] sm:$0xff] %v1450_v27  ;;  %v1295_v39 = vadd.f32 1.0, %v2787_v56  ;;  %v1044_v48 = vsub.f32 0.0, %v1012_v0  ;;  %v1995_v3 = vpop.eup %1994  ;;  %vm2805_vm3 = vcmp.lt.f32.partialorder %v1292_v11, 0.0004427343  ;;  %v1281_v51 = vadd.f32 1.0, %v1280_v17 }
 0x2c4   :  { %v1283_v53 = vand.u32 2147483647, %v2753_v22  ;;  %v1322_v43 = vadd.f32 1.0, %v2797_v45  ;;  %v1449_v36 = vmax.f32 %v1417_v49, 1.1754944e-38  ;;  %v1276_v35 = vsel %vm2757_vm1, %v1273_v14, %v1270_v46 }
 0x2c5   :  { %v1261_v38 = vmul.f32 0.6931472, %v1995_v3  ;;  %2004 = vlog2.f32 %v1295_v39  ;;  %v1420_v34 = vadd.f32 %v1276_v35, %v972_v31  ;;  %v1310_v19 = vand.u32 2147483647, %v2765_v60  ;;  %v1897_v3 = vpop.f32.mrf.mxu0 }
 0x2c6   :  { %v1298_v28 = vmul.f32 -0.5, %v2787_v56  ;;  %2006 = vlog2.f32 %v1322_v43  ;;  %1481 = vst [vmem:[%s2984_s7 + $0x70] sm:$0xff] %v1449_v36  ;;  %v1308_v59 = vadd.f32 1.0, %v1307_v6  ;;  %v1301_v52 = vand.u32 2147483647, %v2787_v56 }
 0x2c7   :  { %v1267_v57 = vsel %vm2776_vm2, %v1264_v24, %v1261_v38  ;;  %v1101_v61 = vmul.f32 1.442695, %v1044_v48  ;;  %v1452_v16 = vmax.f32 %v1420_v34, 1.1754944e-38  ;;  %v1325_v31 = vmul.f32 -0.5, %v2797_v45  ;;  %v2826_v44 = vpop.eup %1996 }
 0x2c8   :  { %v1419_v54 = vadd.f32 %v1267_v57, %v971_v41  ;;  %v1043_v14 = vsub.f32 0.0, %v1011_v18  ;;  %v1291_v32 = vmul.f32 %v2740_v29, %v1290_v26  ;;  %v1282_v63 = vmul.f32 %v2753_v22, %v1281_v51 }
 0x2c9   :  { %vm2830_vm4 = vcmp.lt.f32.partialorder %v1283_v53, 0.0004427343  ;;  %2008 = vpow2.f32 %v1101_v61  ;;  %1484 = vst [vmem:[%s2984_s7 + $0x88] sm:$0xff] %v1452_v16  ;;  %vm2837_vm5 = vcmp.lt.f32.partialorder %v1310_v19, 0.0004427343  ;;  %v1299_v0 = vadd.f32 1.0, %v1298_v28 }
 0x2ca   :  { %v1999_v8 = vpop.eup %1998  ;;  %v1451_v10 = vmax.f32 %v1419_v54, 1.1754944e-38  ;;  %v1313_v29 = vadd.f32 1.0, %v2826_v44  ;;  %v1309_v11 = vmul.f32 %v2765_v60, %v1308_v59  ;;  %v1099_v17 = vmul.f32 1.442695, %v1043_v14  ;;  %v2042_v61 = vld [vmem:[%s2983_s6] ss:$0 sm:$0xff] }
 0x2cb   :  { %v1288_v22 = vmul.f32 0.6931472, %v1999_v8  ;;  %v1014_v30 = vand.u32 2147483647, %v2792_v25  ;;  %vm2847_vm6 = vcmp.lt.f32.partialorder %v1301_v52, 0.0004427343  ;;  %v2853_v7 = vadd.f32 %v2417_v13, %v926_v5 }
 0x2cc   :  { %v2001_v27 = vpop.eup %2000  ;;  %1483 = vst [vmem:[%s2984_s7 + $0x80] sm:$0xff] %v1451_v10  ;;  %v1326_v18 = vadd.f32 1.0, %v1325_v31  ;;  %v1328_v50 = vand.u32 2147483647, %v2797_v45  ;;  %2010 = vlog2.f32 %v1313_v29  ;;  %v1300_v46 = vmul.f32 %v2787_v56, %v1299_v0 }
 0x2cd   :  { %v1294_v60 = vsel %vm2805_vm3, %v1291_v32, %v1288_v22  ;;  %v1279_v26 = vmul.f32 0.6931472, %v2001_v27  ;;  %2012 = vpow2.f32 %v1099_v17  ;;  %v1046_v6 = vsub.f32 0.0, %v1014_v30 }
 0x2ce   :  { %v1422_v49 = vadd.f32 %v1294_v60, %v974_v23  ;;  %v1316_v39 = vmul.f32 -0.5, %v2826_v44  ;;  %v1013_v48 = vand.u32 2147483647, %v2853_v7  ;;  %v2865_v21 = vadd.f32 %v1894_v55, %v2417_v13 }
 0x2cf   :  { %v2003_v51 = vpop.eup %2002  ;;  %v1285_v5 = vsel %vm2830_vm4, %v1282_v63, %v1279_v26  ;;  %v1105_v53 = vmul.f32 1.442695, %v1046_v6  ;;  %v2868_v43 = vadd.f32 %v2417_v13, %v936_v12  ;;  %v1327_v35 = vmul.f32 %v2797_v45, %v1326_v18  ;;  %v946_v45 = vpop.f32.mrf.mxu0 }
 0x2d0   :  { %v1454_v4 = vmax.f32 %v1422_v49, 1.1754944e-38  ;;  %v1421_v23 = vadd.f32 %v1285_v5, %v973_v33  ;;  %v1306_v56 = vmul.f32 0.6931472, %v2003_v51  ;;  %v1045_v36 = vsub.f32 0.0, %v1013_v48 }
 0x2d1   :  { %vm2873_vm7 = vcmp.lt.f32.partialorder %v1328_v50, 0.0004427343  ;;  %2014 = vpow2.f32 %v1105_v53  ;;  %v1016_v34 = vand.u32 2147483647, %v2865_v21  ;;  %v1015_v28 = vand.u32 2147483647, %v2868_v43 }
 0x2d2   :  { %v2005_v19 = vpop.eup %2004  ;;  %1486 = vst [vmem:[%s2984_s7 + $0x98] sm:$0xff] %v1454_v4  ;;  %v1453_v13 = vmax.f32 %v1421_v23, 1.1754944e-38  ;;  %v1312_v37 = vsel %vm2837_vm5, %v1309_v11, %v1306_v56  ;;  %v1103_v33 = vmul.f32 1.442695, %v1045_v36  ;;  %v2889_v16 = vadd.f32 %v2042_v61, %v1897_v3 }
 0x2d3   :  { %v2007_v55 = vpop.eup %2006  ;;  %v1424_v57 = vadd.f32 %v1312_v37, %v976_v62  ;;  %v1297_v59 = vmul.f32 0.6931472, %v2005_v19  ;;  %v1048_v52 = vsub.f32 0.0, %v1016_v34  ;;  %v1317_v31 = vadd.f32 1.0, %v1316_v39 }
 0x2d4   :  { %1485 = vst [vmem:[%s2984_s7 + $0x90] sm:$0xff] %v1453_v13  ;;  %v1324_v54 = vmul.f32 0.6931472, %v2007_v55  ;;  %2016 = vpow2.f32 %v1103_v33  ;;  %v1047_v14 = vsub.f32 0.0, %v1015_v28  ;;  %v2896_v63 = vadd.f32 %v2042_v61, %v946_v45 }
 0x2d5   :  { %v1456_v32 = vmax.f32 %v1424_v57, 1.1754944e-38  ;;  %v1303_v40 = vsel %vm2847_vm6, %v1300_v46, %v1297_v59  ;;  %v1109_v62 = vmul.f32 1.442695, %v1048_v52  ;;  %v1018_v0 = vand.u32 2147483647, %v2889_v16 }
 0x2d6   :  { %v2009_v58 = vpop.eup %2008  ;;  %v1423_v8 = vadd.f32 %v1303_v40, %v975_v20  ;;  %v1330_v10 = vsel %vm2873_vm7, %v1327_v35, %v1324_v54  ;;  %v1107_v41 = vmul.f32 1.442695, %v1047_v14  ;;  %v1319_v12 = vand.u32 2147483647, %v2826_v44 }
 0x2d7   :  { %1488 = vst [vmem:[%s2984_s7 + $0xa8] sm:$0xff] %v1456_v32  ;;  %v1426_v29 = vadd.f32 %v1330_v10, %v978_v15  ;;  %v1340_v22 = vadd.f32 1.0, %v2009_v58  ;;  %2018 = vpow2.f32 %v1109_v62  ;;  %v1050_v9 = vsub.f32 0.0, %v1018_v0 }
 0x2d8   :  { %v1455_v11 = vmax.f32 %v1423_v8, 1.1754944e-38  ;;  %v1318_v30 = vmul.f32 %v2826_v44, %v1317_v31  ;;  %v1017_v15 = vand.u32 2147483647, %v2896_v63  ;;  %v977_v18 = vmax.f32 %v2702_v47, 0.0 }
 0x2d9   :  { %v2011_v20 = vpop.eup %2010  ;;  %v1458_v17 = vmax.f32 %v1426_v29, 1.1754944e-38  ;;  %2020 = vlog2.f32 %v1340_v22  ;;  %v1113_v1 = vmul.f32 1.442695, %v1050_v9  ;;  %vm1320_vm8 = vcmp.lt.f32.partialorder %v1319_v12, 0.0004427343 }
 0x2da   :  { %v2013_v27 = vpop.eup %2012  ;;  %1487 = vst [vmem:[%s2984_s7 + $0xa0] sm:$0xff] %v1455_v11  ;;  %v1315_v24 = vmul.f32 0.6931472, %v2011_v20  ;;  %2022 = vpow2.f32 %v1107_v41  ;;  %v1049_v60 = vsub.f32 0.0, %v1017_v15  ;;  %v1343_v39 = vmul.f32 -0.5, %v2009_v58 }
 0x2db   :  { %1490 = vst [vmem:[%s2984_s7 + $0xb8] sm:$0xff] %v1458_v17  ;;  %v1331_v50 = vadd.f32 1.0, %v2013_v27  ;;  %2024 = vpow2.f32 %v1113_v1  ;;  %v1334_v5 = vmul.f32 -0.5, %v2013_v27  ;;  %v1346_v53 = vand.u32 2147483647, %v2009_v58 }
 0x2dc   :  { %v1321_v44 = vsel %vm1320_vm8, %v1318_v30, %v1315_v24  ;;  %v1111_v49 = vmul.f32 1.442695, %v1049_v60  ;;  %v1344_v51 = vadd.f32 1.0, %v1343_v39  ;;  %v980_v56 = vmax.f32 %v2751_v42, 0.0 }
 0x2dd   :  { %v1425_v26 = vadd.f32 %v1321_v44, %v977_v18  ;;  %2026 = vlog2.f32 %v1331_v50  ;;  %v1335_v19 = vadd.f32 1.0, %v1334_v5  ;;  %vm1347_vm9 = vcmp.lt.f32.partialorder %v1346_v53, 0.0004427343 }
 0x2de   :  { %v2015_v6 = vpop.eup %2014  ;;  %2028 = vpow2.f32 %v1111_v49  ;;  %v1345_v34 = vmul.f32 %v2009_v58, %v1344_v51  ;;  %v1337_v37 = vand.u32 2147483647, %v2013_v27  ;;  %v979_v52 = vmax.f32 %v2762_v2, 0.0 }
 0x2df   :  { %v1457_v46 = vmax.f32 %v1425_v26, 1.1754944e-38  ;;  %v1358_v48 = vadd.f32 1.0, %v2015_v6  ;;  %v1361_v13 = vmul.f32 -0.5, %v2015_v6  ;;  %v1336_v54 = vmul.f32 %v2013_v27, %v1335_v19 }
 0x2e0   :  { %vm1338_vm10 = vcmp.lt.f32.partialorder %v1337_v37, 0.0004427343  ;;  %v1364_v32 = vand.u32 2147483647, %v2015_v6  ;;  %v982_v0 = vmax.f32 %v2792_v25, 0.0  ;;  %v981_v15 = vmax.f32 %v2853_v7, 0.0 }
 0x2e1   :  { %v2017_v3 = vpop.eup %2016  ;;  %1489 = vst [vmem:[%s2984_s7 + $0xb0] sm:$0xff] %v1457_v46  ;;  %2030 = vlog2.f32 %v1358_v48  ;;  %v1362_v31 = vadd.f32 1.0, %v1361_v13  ;;  %v984_v51 = vmax.f32 %v2865_v21, 0.0 }
 0x2e2   :  { %v1349_v47 = vadd.f32 1.0, %v2017_v3  ;;  %v1352_v55 = vmul.f32 -0.5, %v2017_v3  ;;  %v1355_v22 = vand.u32 2147483647, %v2017_v3  ;;  %vm1365_vm11 = vcmp.lt.f32.partialorder %v1364_v32, 0.0004427343 }
 0x2e3   :  { %v1363_v12 = vmul.f32 %v2015_v6, %v1362_v31 }
 0x2e4   :  { %2032 = vlog2.f32 %v1349_v47  ;;  %v2921_v4 = vpop.eup %2018  ;;  %v1353_v58 = vadd.f32 1.0, %v1352_v55  ;;  %vm1356_vm12 = vcmp.lt.f32.partialorder %v1355_v22, 0.0004427343 }
 0x2e5   :  { %v1376_v36 = vadd.f32 1.0, %v2921_v4  ;;  %v1379_v41 = vmul.f32 -0.5, %v2921_v4  ;;  %v1382_v18 = vand.u32 2147483647, %v2921_v4 }
 0x2e6   :  { %v2021_v23 = vpop.eup %2020  ;;  %v1354_v30 = vmul.f32 %v2017_v3, %v1353_v58 }
 0x2e7   :  { %v2925_v35 = vpop.eup %2022  ;;  %v1342_v38 = vmul.f32 0.6931472, %v2021_v23  ;;  %2034 = vlog2.f32 %v1376_v36  ;;  %v1380_v1 = vadd.f32 1.0, %v1379_v41  ;;  %vm1383_vm13 = vcmp.lt.f32.partialorder %v1382_v18, 0.0004427343 }
 0x2e8   :  { %v1367_v33 = vadd.f32 1.0, %v2925_v35  ;;  %v2928_v28 = vpop.eup %2024  ;;  %v1370_v9 = vmul.f32 -0.5, %v2925_v35  ;;  %v1373_v49 = vand.u32 2147483647, %v2925_v35 }
 0x2e9   :  { %v1348_v45 = vsel %vm1347_vm9, %v1345_v34, %v1342_v38  ;;  %v1394_v42 = vadd.f32 1.0, %v2928_v28  ;;  %v1397_v25 = vmul.f32 -0.5, %v2928_v28  ;;  %v1381_v39 = vmul.f32 %v2921_v4, %v1380_v1 }
 0x2ea   :  { %v2027_v57 = vpop.eup %2026  ;;  %v1428_v59 = vadd.f32 %v1348_v45, %v980_v56  ;;  %2036 = vlog2.f32 %v1367_v33  ;;  %v1371_v60 = vadd.f32 1.0, %v1370_v9  ;;  %v1400_v5 = vand.u32 2147483647, %v2928_v28 }
 0x2eb   :  { %v1333_v61 = vmul.f32 0.6931472, %v2027_v57  ;;  %2038 = vlog2.f32 %v1394_v42  ;;  %v2932_v40 = vpop.eup %2028  ;;  %v1398_v48 = vadd.f32 1.0, %v1397_v25  ;;  %v983_v38 = vmax.f32 %v2868_v43, 0.0 }
 0x2ec   :  { %v1460_v14 = vmax.f32 %v1428_v59, 1.1754944e-38  ;;  %v1385_v2 = vadd.f32 1.0, %v2932_v40  ;;  %v1388_v7 = vmul.f32 -0.5, %v2932_v40  ;;  %v1372_v56 = vmul.f32 %v2925_v35, %v1371_v60 }
 0x2ed   :  { %v1339_v62 = vsel %vm1338_vm10, %v1336_v54, %v1333_v61  ;;  %vm1374_vm14 = vcmp.lt.f32.partialorder %v1373_v49, 0.0004427343  ;;  %v986_v34 = vmax.f32 %v2889_v16, 0.0  ;;  %v1399_v13 = vmul.f32 %v2928_v28, %v1398_v48 }
 0x2ee   :  { %v2031_v8 = vpop.eup %2030  ;;  %1492 = vst [vmem:[%s2984_s7 + $0xc8] sm:$0xff] %v1460_v14  ;;  %v1427_v10 = vadd.f32 %v1339_v62, %v979_v52  ;;  %2040 = vlog2.f32 %v1385_v2  ;;  %v1389_v37 = vadd.f32 1.0, %v1388_v7  ;;  %vm1401_vm15 = vcmp.lt.f32.partialorder %v1400_v5, 0.0004427343 }
 0x2ef   :  { %v1360_v29 = vmul.f32 0.6931472, %v2031_v8  ;;  %v1391_v35 = vand.u32 2147483647, %v2932_v40  ;;  %v985_v52 = vmax.f32 %v2896_v63, 0.0 }
 0x2f0   :  { %v1459_v11 = vmax.f32 %v1427_v10, 1.1754944e-38  ;;  %v1390_v16 = vmul.f32 %v2932_v40, %v1389_v37 }
 0x2f1   :  { %v2033_v20 = vpop.eup %2032  ;;  %v1366_v17 = vsel %vm1365_vm11, %v1363_v12, %v1360_v29  ;;  %vm1392_vm0 = vcmp.lt.f32.partialorder %v1391_v35, 0.0004427343 }
 0x2f2   :  { %1491 = vst [vmem:[%s2984_s7 + $0xc0] sm:$0xff] %v1459_v11  ;;  %v1430_v27 = vadd.f32 %v1366_v17, %v982_v0  ;;  %v1351_v24 = vmul.f32 0.6931472, %v2033_v20 }
 0x2f4   :  { %v1462_v50 = vmax.f32 %v1430_v27, 1.1754944e-38  ;;  %v1357_v44 = vsel %vm1356_vm12, %v1354_v30, %v1351_v24  ;;  %v2035_v26 = vpop.eup %2034 }
 0x2f5   :  { %v1429_v6 = vadd.f32 %v1357_v44, %v981_v15  ;;  %v1378_v46 = vmul.f32 0.6931472, %v2035_v26 }
 0x2f6   :  { %1494 = vst [vmem:[%s2984_s7 + $0xd8] sm:$0xff] %v1462_v50 }
 0x2f7   :  { %v2037_v3 = vpop.eup %2036  ;;  %v1461_v47 = vmax.f32 %v1429_v6, 1.1754944e-38  ;;  %v1384_v53 = vsel %vm1383_vm13, %v1381_v39, %v1378_v46 }
 0x2f8   :  { %v1369_v23 = vmul.f32 0.6931472, %v2037_v3  ;;  %v2039_v36 = vpop.eup %2038  ;;  %v1432_v4 = vadd.f32 %v1384_v53, %v984_v51 }
 0x2f9   :  { %1493 = vst [vmem:[%s2984_s7 + $0xd0] sm:$0xff] %v1461_v47  ;;  %v1396_v21 = vmul.f32 0.6931472, %v2039_v36 }
 0x2fa   :  { %v1375_v19 = vsel %vm1374_vm14, %v1372_v56, %v1369_v23  ;;  %v1464_v33 = vmax.f32 %v1432_v4, 1.1754944e-38 }
 0x2fb   :  { %v1431_v45 = vadd.f32 %v1375_v19, %v983_v38  ;;  %v1402_v55 = vsel %vm1401_vm15, %v1399_v13, %v1396_v21  ;;  %v2041_v57 = vpop.eup %2040 }
 0x2fc   :  { %1496 = vst [vmem:[%s2984_s7 + $0xe8] sm:$0xff] %v1464_v33  ;;  %v1434_v59 = vadd.f32 %v1402_v55, %v986_v34  ;;  %v1387_v42 = vmul.f32 0.6931472, %v2041_v57 }
 0x2fd   :  { %v1463_v43 = vmax.f32 %v1431_v45, 1.1754944e-38 }
 0x2fe   :  { %v1466_v28 = vmax.f32 %v1434_v59, 1.1754944e-38  ;;  %v1393_v61 = vsel %vm1392_vm0, %v1390_v16, %v1387_v42 }
 0x2ff   :  { %1495 = vst [vmem:[%s2984_s7 + $0xe0] sm:$0xff] %v1463_v43  ;;  %v1433_v54 = vadd.f32 %v1393_v61, %v985_v52 }
 0x300   :  { %1498 = vst [vmem:[%s2984_s7 + $0xf8] sm:$0xff] %v1466_v28 }
 0x301   :  { %v1465_v31 = vmax.f32 %v1433_v54, 1.1754944e-38 }
 0x303   :  { %1497 = vst [vmem:[%s2984_s7 + $0xf0] sm:$0xff] %v1465_v31 }

</bundles_post_ra>
